<compile_context>
chip_gen: v7x
topology: tpu7x:2x2x1
jax: 0.10.0
libtpu: 0.0.40
codegen_flags: <defaults>
</compile_context>

<pallas_src>
import functools

import jax
import jax.numpy as jnp
from jax import lax
from jax.experimental import pallas as pl
from jax.experimental.pallas import tpu as pltpu

BN_EPS = 1e-5
_LANE = 128
_SUBLANE = 8
_MAX_TILE_ROWS = 2048        # target rows of the flattened conv matrix per grid step


def _conv_tile(x_ref, w_ref, *, KH, KW, O_pad, tile_h, Wp, dilation):
    """Dilated conv for one (image, row-band) tile.

    x_ref : (1, R, C)  flattened padded image, R >= Hp*Wp + (KW-1)*dilation
    w_ref : (KH*KW, C, O_pad) weights (compute dtype, channels zero-padded)
    returns (tile_h*Wp, O_pad) float32; rows enumerate (h, w) with w running
    over the *padded* width Wp -- columns w >= Wo are garbage and are masked /
    sliced away by the callers.
    """
    tile_rows = tile_h * Wp
    r0 = pl.program_id(1) * tile_h                      # first output row of this band
    acc = jnp.zeros((tile_rows, O_pad), jnp.float32)
    for kh in range(KH):
        for kw in range(KW):
            # Contiguous flat window covering x[h+kh*d, w+kw*d, :] for every
            # (h, w) of this band (w taken over the full padded width).
            start = (r0 + kh * dilation) * Wp + kw * dilation
            lhs = x_ref[0, pl.ds(start, tile_rows), :]          # (tile_rows, C)
            rhs = w_ref[kh * KW + kw]                           # (C, O_pad)
            acc = acc + jnp.dot(lhs, rhs, preferred_element_type=jnp.float32)
    return acc


def _stats_kernel(x_ref, w_ref, stats_ref, *, KH, KW, O_pad, tile_h, Wp, Wo, dilation):
    """Pass 1: conv tile + per-block BN partial sums (sum, sum of squares)."""
    acc = _conv_tile(x_ref, w_ref, KH=KH, KW=KW, O_pad=O_pad,
                     tile_h=tile_h, Wp=Wp, dilation=dilation)
    # Only columns w < Wo are real output pixels.
    col = lax.broadcasted_iota(jnp.int32, (tile_h * Wp, 1), 0) % Wp
    masked = jnp.where(col < Wo, acc, 0.0)
    stats_ref[0, 0, 0:1, :] = jnp.sum(masked, axis=0, keepdims=True)
    stats_ref[0, 0, 1:2, :] = jnp.sum(masked * acc, axis=0, keepdims=True)


def _norm_kernel(x_ref, w_ref, scale_ref, shift_ref, o_ref, *, KH, KW, O_pad,
                 tile_h, Wp, dilation):
    """Pass 2: recompute conv tile, apply BN scale/shift + ReLU, lane-dense store."""
    acc = _conv_tile(x_ref, w_ref, KH=KH, KW=KW, O_pad=O_pad,
                     tile_h=tile_h, Wp=Wp, dilation=dilation)
    y = jnp.maximum(acc * scale_ref[...] + shift_ref[...], 0.0)
    o_ref[...] = y.reshape(1, tile_h * Wp, O_pad).astype(o_ref.dtype)


def dsnet_forward(x_nchw, w_oihw, gamma, beta, *, stride=1, padding=0, dilation=2,
                  compute_dtype=jnp.bfloat16):
    """DSNet forward: dilated conv (bias=False) -> BatchNorm2d(train) -> ReLU.

    x_nchw: (N, C, H, W), w_oihw: (O, C, KH, KW).  Returns (N, O, Ho, Wo) f32.
    """
    if stride != 1:
        # TODO(synk): stride > 1 needs strided tap gathers (pl.ds stride=...);
        # DSNet's default (and the tested config) is stride=1.
        raise NotImplementedError("Pallas DSNet path supports stride=1 only")

    N, C, H, W = x_nchw.shape
    O, _, KH, KW = w_oihw.shape
    Ho = (H + 2 * padding - dilation * (KH - 1) - 1) // stride + 1
    Wo = (W + 2 * padding - dilation * (KW - 1) - 1) // stride + 1
    Hp, Wp = H + 2 * padding, W + 2 * padding
    O_pad = ((O + _LANE - 1) // _LANE) * _LANE            # lane-dense channel dim

    # ---- glue: NCHW -> flattened padded NHWC slab, MXU compute dtype --------
    x = jnp.transpose(x_nchw, (0, 2, 3, 1)).astype(compute_dtype)       # (N,H,W,C)
    if padding > 0:
        x = jnp.pad(x, ((0, 0), (padding, padding), (padding, padding), (0, 0)))
    # Overrun rows so every in-kernel tap window stays in bounds (the extra
    # rows only ever feed the discarded w >= Wo columns).
    R = Hp * Wp + (KW - 1) * dilation
    R = ((R + _SUBLANE - 1) // _SUBLANE) * _SUBLANE
    x_flat = jnp.pad(x.reshape(N, Hp * Wp, C), ((0, 0), (0, R - Hp * Wp), (0, 0)))

    # Weight -> (KH*KW, C, O_pad), zero-padded output channels, compute dtype.
    w = jnp.transpose(w_oihw, (2, 3, 1, 0)).reshape(KH * KW, C, O)
    w = jnp.pad(w, ((0, 0), (0, 0), (0, O_pad - O))).astype(compute_dtype)

    # ---- row-band tiling of the output rows of each image -------------------
    tile_h = 1
    for th in range(1, Ho + 1):
        if Ho % th == 0 and th * Wp <= _MAX_TILE_ROWS and \
                (th == Ho or (th * Wp) % _SUBLANE == 0):
            tile_h = th
    T = Ho // tile_h
    tile_rows = tile_h * Wp
    M_valid = N * Ho * Wo                                   # BN population size

    itemsize = jnp.dtype(compute_dtype).itemsize
    conv_flops = 2 * N * Ho * Wp * KH * KW * C * O_pad
    x_bytes = N * R * C * itemsize
    w_bytes = KH * KW * C * O_pad * itemsize
    cparams = pltpu.CompilerParams(
        dimension_semantics=("parallel", "parallel"),       # v7x: both TCs take blocks
        vmem_limit_bytes=32 * 1024 * 1024,                  # explicit, fits v5e/v6e/v7x
    )
    x_spec = pl.BlockSpec((1, R, C), lambda n, t: (n, 0, 0))
    w_spec = pl.BlockSpec((KH * KW, C, O_pad), lambda n, t: (0, 0, 0))

    # ---- pass 1: conv + per-block BN partial sums ----------------------------
    stats = pl.pallas_call(
        functools.partial(_stats_kernel, KH=KH, KW=KW, O_pad=O_pad,
                          tile_h=tile_h, Wp=Wp, Wo=Wo, dilation=dilation),
        out_shape=jax.ShapeDtypeStruct((N, T, 2, O_pad), jnp.float32),
        grid=(N, T),
        in_specs=[x_spec, w_spec],
        out_specs=pl.BlockSpec((1, 1, 2, O_pad), lambda n, t: (n, t, 0, 0)),
        compiler_params=cparams,
        cost_estimate=pl.CostEstimate(
            flops=conv_flops, transcendentals=0,
            bytes_accessed=x_bytes + w_bytes + N * T * 2 * O_pad * 4),
    )(x_flat, w)

    # ---- tiny cross-block reduction + BN coefficients (f32, plain JAX) ------
    totals = jnp.sum(stats, axis=(0, 1))                    # (2, O_pad)
    mean = totals[0] / M_valid
    var = jnp.maximum(totals[1] / M_valid - mean * mean, 0.0)   # biased variance
    gamma_p = jnp.pad(gamma.astype(jnp.float32), (0, O_pad - O))
    beta_p = jnp.pad(beta.astype(jnp.float32), (0, O_pad - O))
    scale_v = gamma_p * lax.rsqrt(var + BN_EPS)
    shift_v = beta_p - mean * scale_v
    scale = scale_v.reshape(1, O_pad)
    shift = shift_v.reshape(1, O_pad)

    # ---- pass 2: conv (recomputed) + scale/shift + ReLU, lane-dense output ---
    y = pl.pallas_call(
        functools.partial(_norm_kernel, KH=KH, KW=KW, O_pad=O_pad,
                          tile_h=tile_h, Wp=Wp, dilation=dilation),
        out_shape=jax.ShapeDtypeStruct((N, Ho * Wp, O_pad), jnp.float32),
        grid=(N, T),
        in_specs=[x_spec, w_spec,
                  pl.BlockSpec((1, O_pad), lambda n, t: (0, 0)),
                  pl.BlockSpec((1, O_pad), lambda n, t: (0, 0))],
        out_specs=pl.BlockSpec((1, tile_rows, O_pad), lambda n, t: (n, t, 0)),
        compiler_params=cparams,
        cost_estimate=pl.CostEstimate(
            flops=conv_flops, transcendentals=0,
            bytes_accessed=x_bytes + w_bytes + 2 * O_pad * 4
                           + N * Ho * Wp * O_pad * 4),
    )(x_flat, w, scale, shift)

    # ---- glue: drop padded width/channels, back to NCHW ----------------------
    y = y.reshape(N, Ho, Wp, O_pad)[:, :, :Wo, :O]
    return jnp.transpose(y, (0, 3, 1, 2))                    # (N, O, Ho, Wo)


def _reference(x_nchw, w_oihw, gamma, beta, *, stride=1, padding=0, dilation=2):
    """Pure-JAX reference (conv + training-mode BN + ReLU), NCHW, f32."""
    y = lax.conv_general_dilated(
        x_nchw, w_oihw, window_strides=(stride, stride),
        padding=[(padding, padding), (padding, padding)],
        rhs_dilation=(dilation, dilation),
        dimension_numbers=("NCHW", "OIHW", "NCHW"))
    mean = jnp.mean(y, axis=(0, 2, 3), keepdims=True)
    var = jnp.mean(jnp.square(y - mean), axis=(0, 2, 3), keepdims=True)
    y = (y - mean) * lax.rsqrt(var + BN_EPS)
    y = y * gamma.reshape(1, -1, 1, 1) + beta.reshape(1, -1, 1, 1)
    return jnp.maximum(y, 0.0)


if __name__ == "__main__":
    # DSNet(in_planes=4, out_planes=8, kernel_size=3, stride=1, padding=0, dilation=2)
    N, C, H, W = 2, 4, 16, 16
    O, K = 8, 3

    key = jax.random.PRNGKey(0)
    kx, kw = jax.random.split(key)
    x = jax.random.normal(kx, (N, C, H, W), dtype=jnp.float32)
    conv_w = jax.random.normal(kw, (O, C, K, K), dtype=jnp.float32) * 0.1
    gamma = jnp.ones((O,), dtype=jnp.float32)     # BatchNorm2d affine init
    beta = jnp.zeros((O,), dtype=jnp.float32)

    ref = _reference(x, conv_w, gamma, beta, stride=1, padding=0, dilation=2)

    # f32 MXU path: should match the f32 reference tightly.
    out_f32 = dsnet_forward(x, conv_w, gamma, beta, stride=1, padding=0, dilation=2,
                            compute_dtype=jnp.float32)
    out_f32 = jax.block_until_ready(out_f32)
    assert out_f32.shape == ref.shape, (out_f32.shape, ref.shape)
    assert jnp.allclose(out_f32, ref, rtol=2e-4, atol=2e-4)

    # bf16 MXU path (performance default): f32 accumulation / BN, bf16 operands.
    out_bf16 = dsnet_forward(x, conv_w, gamma, beta, stride=1, padding=0, dilation=2,
                             compute_dtype=jnp.bfloat16)
    out_bf16 = jax.block_until_ready(out_bf16)
    assert out_bf16.shape == ref.shape, (out_bf16.shape, ref.shape)
    assert jnp.allclose(out_bf16, ref, rtol=5e-2, atol=5e-2)

    print("KERNEL_OK")
</pallas_src>

<mosaic_0001>
module attributes {stable_mosaic.version = 11 : i64} {
  func.func @_stats_kernel(%arg0: i32, %arg1: i32, %arg2: memref<1x264x4xf32, #tpu.memory_space<vmem>>, %arg3: memref<9x4x128xf32, #tpu.memory_space<vmem>>, %arg4: memref<1x1x2x128xf32, #tpu.memory_space<vmem>>) attributes {dimension_semantics = [#tpu.dimension_semantics<parallel>, #tpu.dimension_semantics<parallel>], iteration_bounds = array<i64: 2, 1>, scalar_prefetch = 0 : i64, scratch_operands = 0 : i64, tpu.core_type = #tpu.core_type<tc>, window_params = [{transform_indices = @transform_0, window_bounds = array<i64: 1, 264, 4>}, {pipeline_mode = #tpu.pipeline_mode<synchronous>, transform_indices = @transform_1, window_bounds = array<i64: 9, 4, 128>}, {transform_indices = @transform_2, window_bounds = array<i64: 1, 1, 2, 128>}]} {
    %c12_i32 = arith.constant 12 : i32
    %0 = arith.muli %arg1, %c12_i32 : i32
    %cst = arith.constant 0.000000e+00 : f32
    %1 = vector.broadcast %cst : f32 to vector<192x128xf32>
    %c0_i32 = arith.constant 0 : i32
    %2 = arith.addi %0, %c0_i32 : i32
    %c16_i32 = arith.constant 16 : i32
    %3 = arith.muli %2, %c16_i32 : i32
    %c0_i32_0 = arith.constant 0 : i32
    %4 = arith.addi %3, %c0_i32_0 : i32
    %c0 = arith.constant 0 : index
    %5 = arith.index_cast %4 : i32 to index
    %c0_1 = arith.constant 0 : index
    %6 = vector.load %arg2[%c0, %5, %c0_1] : memref<1x264x4xf32, #tpu.memory_space<vmem>>, vector<1x192x4xf32>
    %7 = vector.shape_cast %6 : vector<1x192x4xf32> to vector<192x4xf32>
    %c0_2 = arith.constant 0 : index
    %c0_3 = arith.constant 0 : index
    %c0_4 = arith.constant 0 : index
    %8 = vector.load %arg3[%c0_2, %c0_3, %c0_4] : memref<9x4x128xf32, #tpu.memory_space<vmem>>, vector<1x4x128xf32>
    %9 = vector.shape_cast %8 : vector<1x4x128xf32> to vector<4x128xf32>
    %cst_5 = arith.constant dense<0.000000e+00> : vector<192x128xf32>
    %10 = tpu.matmul %7, %9, %cst_5 {dimension_numbers = #tpu.dot_dimension_numbers<[1], [0], [0], [1], [0, 0, 1, 1], [], []>} : vector<192x4xf32>, vector<4x128xf32>, vector<192x128xf32> -> vector<192x128xf32>
    %11 = arith.addf %1, %10 : vector<192x128xf32>
    %c0_i32_6 = arith.constant 0 : i32
    %12 = arith.addi %0, %c0_i32_6 : i32
    %c16_i32_7 = arith.constant 16 : i32
    %13 = arith.muli %12, %c16_i32_7 : i32
    %c2_i32 = arith.constant 2 : i32
    %14 = arith.addi %13, %c2_i32 : i32
    %c0_8 = arith.constant 0 : index
    %15 = arith.index_cast %14 : i32 to index
    %c0_9 = arith.constant 0 : index
    %16 = vector.load %arg2[%c0_8, %15, %c0_9] : memref<1x264x4xf32, #tpu.memory_space<vmem>>, vector<1x192x4xf32>
    %17 = vector.shape_cast %16 : vector<1x192x4xf32> to vector<192x4xf32>
    %c1 = arith.constant 1 : index
    %c0_10 = arith.constant 0 : index
    %c0_11 = arith.constant 0 : index
    %18 = vector.load %arg3[%c1, %c0_10, %c0_11] : memref<9x4x128xf32, #tpu.memory_space<vmem>>, vector<1x4x128xf32>
    %19 = vector.shape_cast %18 : vector<1x4x128xf32> to vector<4x128xf32>
    %cst_12 = arith.constant dense<0.000000e+00> : vector<192x128xf32>
    %20 = tpu.matmul %17, %19, %cst_12 {dimension_numbers = #tpu.dot_dimension_numbers<[1], [0], [0], [1], [0, 0, 1, 1], [], []>} : vector<192x4xf32>, vector<4x128xf32>, vector<192x128xf32> -> vector<192x128xf32>
    %21 = arith.addf %11, %20 : vector<192x128xf32>
    %c0_i32_13 = arith.constant 0 : i32
    %22 = arith.addi %0, %c0_i32_13 : i32
    %c16_i32_14 = arith.constant 16 : i32
    %23 = arith.muli %22, %c16_i32_14 : i32
    %c4_i32 = arith.constant 4 : i32
    %24 = arith.addi %23, %c4_i32 : i32
    %c0_15 = arith.constant 0 : index
    %25 = arith.index_cast %24 : i32 to index
    %c0_16 = arith.constant 0 : index
    %26 = vector.load %arg2[%c0_15, %25, %c0_16] : memref<1x264x4xf32, #tpu.memory_space<vmem>>, vector<1x192x4xf32>
    %27 = vector.shape_cast %26 : vector<1x192x4xf32> to vector<192x4xf32>
    %c2 = arith.constant 2 : index
    %c0_17 = arith.constant 0 : index
    %c0_18 = arith.constant 0 : index
    %28 = vector.load %arg3[%c2, %c0_17, %c0_18] : memref<9x4x128xf32, #tpu.memory_space<vmem>>, vector<1x4x128xf32>
    %29 = vector.shape_cast %28 : vector<1x4x128xf32> to vector<4x128xf32>
    %cst_19 = arith.constant dense<0.000000e+00> : vector<192x128xf32>
    %30 = tpu.matmul %27, %29, %cst_19 {dimension_numbers = #tpu.dot_dimension_numbers<[1], [0], [0], [1], [0, 0, 1, 1], [], []>} : vector<192x4xf32>, vector<4x128xf32>, vector<192x128xf32> -> vector<192x128xf32>
    %31 = arith.addf %21, %30 : vector<192x128xf32>
    %c2_i32_20 = arith.constant 2 : i32
    %32 = arith.addi %0, %c2_i32_20 : i32
    %c16_i32_21 = arith.constant 16 : i32
    %33 = arith.muli %32, %c16_i32_21 : i32
    %c0_i32_22 = arith.constant 0 : i32
    %34 = arith.addi %33, %c0_i32_22 : i32
    %c0_23 = arith.constant 0 : index
    %35 = arith.index_cast %34 : i32 to index
    %c0_24 = arith.constant 0 : index
    %36 = vector.load %arg2[%c0_23, %35, %c0_24] : memref<1x264x4xf32, #tpu.memory_space<vmem>>, vector<1x192x4xf32>
    %37 = vector.shape_cast %36 : vector<1x192x4xf32> to vector<192x4xf32>
    %c3 = arith.constant 3 : index
    %c0_25 = arith.constant 0 : index
    %c0_26 = arith.constant 0 : index
    %38 = vector.load %arg3[%c3, %c0_25, %c0_26] : memref<9x4x128xf32, #tpu.memory_space<vmem>>, vector<1x4x128xf32>
    %39 = vector.shape_cast %38 : vector<1x4x128xf32> to vector<4x128xf32>
    %cst_27 = arith.constant dense<0.000000e+00> : vector<192x128xf32>
    %40 = tpu.matmul %37, %39, %cst_27 {dimension_numbers = #tpu.dot_dimension_numbers<[1], [0], [0], [1], [0, 0, 1, 1], [], []>} : vector<192x4xf32>, vector<4x128xf32>, vector<192x128xf32> -> vector<192x128xf32>
    %41 = arith.addf %31, %40 : vector<192x128xf32>
    %c2_i32_28 = arith.constant 2 : i32
    %42 = arith.addi %0, %c2_i32_28 : i32
    %c16_i32_29 = arith.constant 16 : i32
    %43 = arith.muli %42, %c16_i32_29 : i32
    %c2_i32_30 = arith.constant 2 : i32
    %44 = arith.addi %43, %c2_i32_30 : i32
    %c0_31 = arith.constant 0 : index
    %45 = arith.index_cast %44 : i32 to index
    %c0_32 = arith.constant 0 : index
    %46 = vector.load %arg2[%c0_31, %45, %c0_32] : memref<1x264x4xf32, #tpu.memory_space<vmem>>, vector<1x192x4xf32>
    %47 = vector.shape_cast %46 : vector<1x192x4xf32> to vector<192x4xf32>
    %c4 = arith.constant 4 : index
    %c0_33 = arith.constant 0 : index
    %c0_34 = arith.constant 0 : index
    %48 = vector.load %arg3[%c4, %c0_33, %c0_34] : memref<9x4x128xf32, #tpu.memory_space<vmem>>, vector<1x4x128xf32>
    %49 = vector.shape_cast %48 : vector<1x4x128xf32> to vector<4x128xf32>
    %cst_35 = arith.constant dense<0.000000e+00> : vector<192x128xf32>
    %50 = tpu.matmul %47, %49, %cst_35 {dimension_numbers = #tpu.dot_dimension_numbers<[1], [0], [0], [1], [0, 0, 1, 1], [], []>} : vector<192x4xf32>, vector<4x128xf32>, vector<192x128xf32> -> vector<192x128xf32>
    %51 = arith.addf %41, %50 : vector<192x128xf32>
    %c2_i32_36 = arith.constant 2 : i32
    %52 = arith.addi %0, %c2_i32_36 : i32
    %c16_i32_37 = arith.constant 16 : i32
    %53 = arith.muli %52, %c16_i32_37 : i32
    %c4_i32_38 = arith.constant 4 : i32
    %54 = arith.addi %53, %c4_i32_38 : i32
    %c0_39 = arith.constant 0 : index
    %55 = arith.index_cast %54 : i32 to index
    %c0_40 = arith.constant 0 : index
    %56 = vector.load %arg2[%c0_39, %55, %c0_40] : memref<1x264x4xf32, #tpu.memory_space<vmem>>, vector<1x192x4xf32>
    %57 = vector.shape_cast %56 : vector<1x192x4xf32> to vector<192x4xf32>
    %c5 = arith.constant 5 : index
    %c0_41 = arith.constant 0 : index
    %c0_42 = arith.constant 0 : index
    %58 = vector.load %arg3[%c5, %c0_41, %c0_42] : memref<9x4x128xf32, #tpu.memory_space<vmem>>, vector<1x4x128xf32>
    %59 = vector.shape_cast %58 : vector<1x4x128xf32> to vector<4x128xf32>
    %cst_43 = arith.constant dense<0.000000e+00> : vector<192x128xf32>
    %60 = tpu.matmul %57, %59, %cst_43 {dimension_numbers = #tpu.dot_dimension_numbers<[1], [0], [0], [1], [0, 0, 1, 1], [], []>} : vector<192x4xf32>, vector<4x128xf32>, vector<192x128xf32> -> vector<192x128xf32>
    %61 = arith.addf %51, %60 : vector<192x128xf32>
    %c4_i32_44 = arith.constant 4 : i32
    %62 = arith.addi %0, %c4_i32_44 : i32
    %c16_i32_45 = arith.constant 16 : i32
    %63 = arith.muli %62, %c16_i32_45 : i32
    %c0_i32_46 = arith.constant 0 : i32
    %64 = arith.addi %63, %c0_i32_46 : i32
    %c0_47 = arith.constant 0 : index
    %65 = arith.index_cast %64 : i32 to index
    %c0_48 = arith.constant 0 : index
    %66 = vector.load %arg2[%c0_47, %65, %c0_48] : memref<1x264x4xf32, #tpu.memory_space<vmem>>, vector<1x192x4xf32>
    %67 = vector.shape_cast %66 : vector<1x192x4xf32> to vector<192x4xf32>
    %c6 = arith.constant 6 : index
    %c0_49 = arith.constant 0 : index
    %c0_50 = arith.constant 0 : index
    %68 = vector.load %arg3[%c6, %c0_49, %c0_50] : memref<9x4x128xf32, #tpu.memory_space<vmem>>, vector<1x4x128xf32>
    %69 = vector.shape_cast %68 : vector<1x4x128xf32> to vector<4x128xf32>
    %cst_51 = arith.constant dense<0.000000e+00> : vector<192x128xf32>
    %70 = tpu.matmul %67, %69, %cst_51 {dimension_numbers = #tpu.dot_dimension_numbers<[1], [0], [0], [1], [0, 0, 1, 1], [], []>} : vector<192x4xf32>, vector<4x128xf32>, vector<192x128xf32> -> vector<192x128xf32>
    %71 = arith.addf %61, %70 : vector<192x128xf32>
    %c4_i32_52 = arith.constant 4 : i32
    %72 = arith.addi %0, %c4_i32_52 : i32
    %c16_i32_53 = arith.constant 16 : i32
    %73 = arith.muli %72, %c16_i32_53 : i32
    %c2_i32_54 = arith.constant 2 : i32
    %74 = arith.addi %73, %c2_i32_54 : i32
    %c0_55 = arith.constant 0 : index
    %75 = arith.index_cast %74 : i32 to index
    %c0_56 = arith.constant 0 : index
    %76 = vector.load %arg2[%c0_55, %75, %c0_56] : memref<1x264x4xf32, #tpu.memory_space<vmem>>, vector<1x192x4xf32>
    %77 = vector.shape_cast %76 : vector<1x192x4xf32> to vector<192x4xf32>
    %c7 = arith.constant 7 : index
    %c0_57 = arith.constant 0 : index
    %c0_58 = arith.constant 0 : index
    %78 = vector.load %arg3[%c7, %c0_57, %c0_58] : memref<9x4x128xf32, #tpu.memory_space<vmem>>, vector<1x4x128xf32>
    %79 = vector.shape_cast %78 : vector<1x4x128xf32> to vector<4x128xf32>
    %cst_59 = arith.constant dense<0.000000e+00> : vector<192x128xf32>
    %80 = tpu.matmul %77, %79, %cst_59 {dimension_numbers = #tpu.dot_dimension_numbers<[1], [0], [0], [1], [0, 0, 1, 1], [], []>} : vector<192x4xf32>, vector<4x128xf32>, vector<192x128xf32> -> vector<192x128xf32>
    %81 = arith.addf %71, %80 : vector<192x128xf32>
    %c4_i32_60 = arith.constant 4 : i32
    %82 = arith.addi %0, %c4_i32_60 : i32
    %c16_i32_61 = arith.constant 16 : i32
    %83 = arith.muli %82, %c16_i32_61 : i32
    %c4_i32_62 = arith.constant 4 : i32
    %84 = arith.addi %83, %c4_i32_62 : i32
    %c0_63 = arith.constant 0 : index
    %85 = arith.index_cast %84 : i32 to index
    %c0_64 = arith.constant 0 : index
    %86 = vector.load %arg2[%c0_63, %85, %c0_64] : memref<1x264x4xf32, #tpu.memory_space<vmem>>, vector<1x192x4xf32>
    %87 = vector.shape_cast %86 : vector<1x192x4xf32> to vector<192x4xf32>
    %c8 = arith.constant 8 : index
    %c0_65 = arith.constant 0 : index
    %c0_66 = arith.constant 0 : index
    %88 = vector.load %arg3[%c8, %c0_65, %c0_66] : memref<9x4x128xf32, #tpu.memory_space<vmem>>, vector<1x4x128xf32>
    %89 = vector.shape_cast %88 : vector<1x4x128xf32> to vector<4x128xf32>
    %cst_67 = arith.constant dense<0.000000e+00> : vector<192x128xf32>
    %90 = tpu.matmul %87, %89, %cst_67 {dimension_numbers = #tpu.dot_dimension_numbers<[1], [0], [0], [1], [0, 0, 1, 1], [], []>} : vector<192x4xf32>, vector<4x128xf32>, vector<192x128xf32> -> vector<192x128xf32>
    %91 = arith.addf %81, %90 : vector<192x128xf32>
    %92 = tpu.iota {dimensions = array<i32: 0>} : vector<192x1xi32>
    %c16_i32_68 = arith.constant 16 : i32
    %c0_i32_69 = arith.constant 0 : i32
    %93 = arith.cmpi eq, %c16_i32_68, %c0_i32_69 : i32
    %c1_i32 = arith.constant 1 : i32
    %94 = arith.select %93, %c1_i32, %c16_i32_68 : i32
    %95 = vector.broadcast %94 : i32 to vector<192x1xi32>
    %96 = arith.remsi %92, %95 : vector<192x1xi32>
    %c0_i32_70 = arith.constant 0 : i32
    %97 = vector.broadcast %c0_i32_70 : i32 to vector<192x1xi32>
    %98 = arith.cmpi ne, %96, %97 : vector<192x1xi32>
    %c0_i32_71 = arith.constant 0 : i32
    %99 = vector.broadcast %c0_i32_71 : i32 to vector<192x1xi32>
    %100 = arith.cmpi slt, %96, %99 : vector<192x1xi32>
    %c0_i32_72 = arith.constant 0 : i32
    %101 = arith.cmpi slt, %94, %c0_i32_72 : i32
    %102 = vector.broadcast %101 : i1 to vector<192x1xi1>
    %103 = vector.broadcast %102 : vector<192x1xi1> to vector<192x1xi1>
    %104 = arith.xori %100, %103 : vector<192x1xi1>
    %105 = arith.andi %104, %98 : vector<192x1xi1>
    %106 = vector.broadcast %94 : i32 to vector<192x1xi32>
    %107 = arith.addi %96, %106 : vector<192x1xi32>
    %108 = arith.select %105, %107, %96 : vector<192x1xi1>, vector<192x1xi32>
    %c12_i32_73 = arith.constant 12 : i32
    %109 = vector.broadcast %c12_i32_73 : i32 to vector<192x1xi32>
    %110 = arith.cmpi slt, %108, %109 : vector<192x1xi32>
    %cst_74 = arith.constant 0.000000e+00 : f32
    %111 = vector.shape_cast %110 : vector<192x1xi1> to vector<192x1xi1>
    %112 = vector.broadcast %111 : vector<192x1xi1> to vector<192x128xi1>
    %113 = vector.broadcast %cst_74 : f32 to vector<192x128xf32>
    %114 = arith.select %112, %91, %113 : vector<192x128xi1>, vector<192x128xf32>
    %cst_75 = arith.constant dense<0.000000e+00> : vector<128xf32>
    %115 = vector.multi_reduction <add>, %114, %cst_75 [0] : vector<192x128xf32> to vector<128xf32>
    %116 = vector.shape_cast %115 : vector<128xf32> to vector<1x128xf32>
    %c0_76 = arith.constant 0 : index
    %c0_77 = arith.constant 0 : index
    %c0_78 = arith.constant 0 : index
    %c0_79 = arith.constant 0 : index
    %117 = vector.load %arg4[%c0_76, %c0_77, %c0_78, %c0_79] : memref<1x1x2x128xf32, #tpu.memory_space<vmem>>, vector<1x1x1x128xf32>
    %118 = vector.shape_cast %117 : vector<1x1x1x128xf32> to vector<1x128xf32>
    %119 = vector.shape_cast %116 : vector<1x128xf32> to vector<1x1x1x128xf32>
    tpu.vector_store %arg4[%c0_76, %c0_77, %c0_78, %c0_79], %119 {strides = array<i32>} : memref<1x1x2x128xf32, #tpu.memory_space<vmem>>, vector<1x1x1x128xf32>,
    %120 = arith.mulf %114, %91 : vector<192x128xf32>
    %cst_80 = arith.constant dense<0.000000e+00> : vector<128xf32>
    %121 = vector.multi_reduction <add>, %120, %cst_80 [0] : vector<192x128xf32> to vector<128xf32>
    %122 = vector.shape_cast %121 : vector<128xf32> to vector<1x128xf32>
    %c0_81 = arith.constant 0 : index
    %c0_82 = arith.constant 0 : index
    %c1_83 = arith.constant 1 : index
    %c0_84 = arith.constant 0 : index
    %123 = vector.load %arg4[%c0_81, %c0_82, %c1_83, %c0_84] : memref<1x1x2x128xf32, #tpu.memory_space<vmem>>, vector<1x1x1x128xf32>
    %124 = vector.shape_cast %123 : vector<1x1x1x128xf32> to vector<1x128xf32>
    %125 = vector.shape_cast %122 : vector<1x128xf32> to vector<1x1x1x128xf32>
    tpu.vector_store %arg4[%c0_81, %c0_82, %c1_83, %c0_84], %125 {strides = array<i32>} : memref<1x1x2x128xf32, #tpu.memory_space<vmem>>, vector<1x1x1x128xf32>,
    return
  }
  func.func @transform_0(%arg0: i32, %arg1: i32) -> (i32, i32, i32) {
    %c0_i32 = arith.constant 0 : i32
    %c0_i32_0 = arith.constant 0 : i32
    %c0_i32_1 = arith.constant 0 : i32
    return %arg0, %c0_i32, %c0_i32_0 : i32, i32, i32
  }
  func.func @transform_1(%arg0: i32, %arg1: i32) -> (i32, i32, i32) {
    %c0_i32 = arith.constant 0 : i32
    %c0_i32_0 = arith.constant 0 : i32
    %c0_i32_1 = arith.constant 0 : i32
    %c0_i32_2 = arith.constant 0 : i32
    return %c0_i32, %c0_i32_0, %c0_i32_1 : i32, i32, i32
  }
  func.func @transform_2(%arg0: i32, %arg1: i32) -> (i32, i32, i32, i32) {
    %c0_i32 = arith.constant 0 : i32
    %c0_i32_0 = arith.constant 0 : i32
    %c0_i32_1 = arith.constant 0 : i32
    return %arg0, %arg1, %c0_i32, %c0_i32_0 : i32, i32, i32, i32
  }
}

</mosaic_0001>

<bundles_post_ra>
// kernel: tpu_custom_call.1
= control target key start
LH: loop header
LB: loop body
LE: loop exit
PB: predicated region body
PF: predicated region fallthrough
CT: control target
= control target key end

     0   :  { %7 = vsyncpa [#allocation3], 0  ;;  %s5715_s0 = inlined_call_operand.vmem [shape: f32[2,264,4], index: 0, kind: input, shape index: {}]   ;;  %s5716_s1 = inlined_call_operand.vmem [shape: f32[9,4,128], index: 1, kind: input, shape index: {}]   ;;  %s5717_s2 = inlined_call_operand.hbm [shape: f32[2,1,2,128], index: 2, kind: output, shape index: {}]  }
   0x1   :  { %9 = vsyncpa [#allocation3 + $0x1], 0  ;;  %s4877_s9 = smov 0   ;;  %s4879_s10 = smov 0  }
   0x2   :  { %s4881_s11 = smov 0   ;;  %s4883_s12 = smov 0  }
   0x3   :  { %s4885_s13 = smov 0   ;;  %s4887_s14 = smov 0  }
   0x4 LB: > { %s3528_s15 = sadd.s32 4294967295, %s4859_s14   ;;  %s3529_s16 = sadd.s32 4294967294, %s4859_s14   ;;  %s4859_s14 = sphi %s4887_s14, %s15_s14   ;;  %s4855_s13 = sphi %s4885_s13, %s5733_s13   ;;  %s4851_s12 = sphi %s4883_s12, %s5732_s12   ;;  %s4847_s11 = sphi %s4881_s11, %s5731_s11   ;;  %s4843_s10 = sphi %s4879_s10, %s5730_s10   ;;  %s4839_s9 = sphi %s4877_s9, %s5729_s9  }
   0x5   : > { %s27_s17 = sadd.s32 1, %s4855_s13  ;;  %s83_s18 = sadd.s32 1, %s4847_s11 }
   0x6   : > { %p29_p0 = scmp.ge.s32.totalorder %s27_s17, 2  ;;  %p93_p1 = scmp.ne.s32.totalorder %s4847_s11, %s4843_s10 }
   0x7   : > { %p94_p2 = scmp.eq.s32.totalorder %s3528_s15, 1  ;;  %p99_p3 = scmp.ne.s32.totalorder %s4843_s10, %s4839_s9 }
   0x8   : > { %s5735_s17 = smov (%p29_p0, %s27_s17), 0  ;;  %p100_p5 = scmp.eq.s32.totalorder %s3529_s16, 1 }
   0x9   : > { %p4917_p4 = por %p94_p2, %p93_p1  ;;  %s78_s20 = ssub.s32 %s4855_s13, %s5735_s17 }
   0xa   : > { %p3532_p6 = scmp.ge.s32.totalorder %s4859_s14, 1  ;;  %p81_p7 = scmp.eq.s32.totalorder %s78_s20, 0 }
   0xb   : > { %p4924_p8 = por %p100_p5, %p99_p3  ;;  %p129_p9 = scmp.lt.s32.totalorder %s4859_s14, 3 }
   0xc   : > { %s4930_s22 = scalar_select %p81_p7, %s4847_s11, %s83_s18  }
   0xd   : > { %p130_p10 = pnand %p3532_p6, %p129_p9 }
   0xf   : > { %133 = sbr.rel (%p130_p10) target bundleno = 491 (0x1eb), region = 28 }
  0x16   : > { %v3559_v0 = vld [vmem:[%s5716_s1 + $0x4] sm:$0xf]  ;;  %vm285_vm0 = vcmask 1043456   ;;  %v4938_v1 = vld [vmem:[%s5716_s1 + $0x10] sm:$0xf]  ;;  %p151_p11 = scmp.lt.s32.totalorder %s4851_s12, 1 }
  0x17   : > { %4189 = vmatprep.subr.msk.mxu1 %vm285_vm0, %v3559_v0  ;;  %4341 = vmatprep.subr.msk.mxu0 %vm285_vm0, %v4938_v1  ;;  %v183_v2 = vld [vmem:[%s5716_s1] sm:$0xf]  ;;  %v3784_v3 = vld [vmem:[%s5716_s1 + $0x14] sm:$0xf]  ;;  %vm212_vm1 = vcmask 31744   ;;  %s148_s28 = sand.u32 1, %s4843_s10  }
  0x18   : > { %4190 = vmatpush3.msk.msra.mxu1 %vm285_vm0, %v3559_v0  ;;  %4342 = vmatpush3.msk.msra.mxu0 %vm285_vm0, %v4938_v1  ;;  %s152_s3 = scalar_select %p151_p11, %s4851_s12, 1  ;;  %v3834_v10 = vld [vmem:[%s5716_s1 + $0x18] sm:$0xf]  ;;  %v4977_v11 = vld [vmem:[%s5716_s1 + $0x8] sm:$0xf] }
  0x19   : > { %4227 = vmatprep.subr.msk.mxu1 %vm285_vm0, %v183_v2  ;;  %4379 = vmatprep.subr.msk.mxu0 %vm285_vm0, %v3784_v3  ;;  %v5058_v25 = vld [vmem:[%s5716_s1 + $0x1c] sm:$0xf]  ;;  %v5176_v49 = vld [vmem:[%s5716_s1 + $0xc] sm:$0xf]  ;;  %s3533_s29 = sshll.u32 %s148_s28, 1  ;;  %s3961_s30 = sshll.u32 %s4851_s12, 5 }
  0x1a   : > { %s4725_s4 = smul.u32 264, %s152_s3  ;;  %s150_s3 = scalar_lea.vmem [#allocation2], %s3533_s29 }
  0x1b   : > { %s3414_s8 = scalar_lea.sflag [#allocation3], %s148_s28  ;;  %s4861_s12 = smov [#allocation2]  }
  0x1c   : > { %s4959_s7 = scalar_lea.vmem %s5715_s0, %s4725_s4  ;;  %s3428_s4 = sshll.u32 %s150_s3, 4  ;;  %s5670_s4 = int_to_ptr.vmem [resolvable:$true] %s3428_s4 }
  0x1d   : > { %v3535_v4 = vld [vmem:[%s4959_s7 + $0x2] sm:$0xff]  ;;  %v3536_v6 = vld [vmem:[%s4959_s7 + $0xa] sm:$0xff]  ;;  %v3537_v8 = vld [vmem:[%s4959_s7 + $0x12] sm:$0xff]  ;;  %s4781_s15 = scalar_lea.vmem %s5670_s4, 32  ;;  %s4785_s16 = sshll.u32 %s4861_s12, 4  ;;  %s4786_s16 = int_to_ptr.vmem [resolvable:$false] %s4785_s16 }
  0x1e   : > { %v3710_v5 = vld [vmem:[%s4959_s7 + $0x22] sm:$0xff]  ;;  %4191 = vmatprep.mubr.msk.f32.mxu1 %vm212_vm1, %v3535_v4  ;;  %v3711_v7 = vld [vmem:[%s4959_s7 + $0x2a] sm:$0xff]  ;;  %v3712_v9 = vld [vmem:[%s4959_s7 + $0x32] sm:$0xff]  ;;  %p4782_p12 = scmp.ne.s32.totalorder %s5670_s4, %s4781_s15  ;;  %s4787_s18 = scalar_lea.vmem %s4786_s16, 64 }
  0x1f   : > { %4343 = vmatprep.mubr.msk.f32.mxu0 %vm212_vm1, %v3710_v5  ;;  %4192 = vmatmul.mubr.msk.f32.vlgmr.msra.gmra.mrb[0].mxu1 %vm212_vm1, %v3536_v6  ;;  %v3538_v12 = vld [vmem:[%s4959_s7 + $0x1a] sm:$0xff]  ;;  %v4986_v14 = vld [vmem:[%s4959_s7 + $0x42] sm:$0xff]  ;;  %v4997_v15 = vld [vmem:[%s4959_s7 + $0x4a] sm:$0xff]  ;;  %p4788_p1 = scmp.lt.s32.totalorder %s5670_s4, %s4786_s16  ;;  %p4789_p2 = scmp.lt.s32.totalorder %s4787_s18, %s4781_s15 }
  0x20   : > { %4344 = vmatmul.mubr.msk.f32.vlgmr.msra.gmra.mrb[0].mxu0 %vm212_vm1, %v3711_v7  ;;  %4228 = vmatpush3.msk.msra.mxu1 %vm285_vm0, %v183_v2  ;;  %v3713_v13 = vld [vmem:[%s4959_s7 + $0x3a] sm:$0xff]  ;;  %v5000_v16 = vld [vmem:[%s4959_s7 + $0x52] sm:$0xff]  ;;  %v5012_v18 = vld [vmem:[%s4959_s7 + $0x62] sm:$0xff]  ;;  %p4783_p13 = pnand %p4782_p12, %p4917_p4 }
  0x21   : > { %4380 = vmatpush3.msk.msra.mxu0 %vm285_vm0, %v3784_v3  ;;  %4194 = vmatprep.mubr.msk.f32.mxu1 %vm212_vm1, %v3537_v8  ;;  %v5009_v17 = vld [vmem:[%s4959_s7 + $0x5a] sm:$0xff]  ;;  %v5022_v19 = vld [vmem:[%s4959_s7 + $0x6a] sm:$0xff]  ;;  %v5025_v20 = vld [vmem:[%s4959_s7 + $0x72] sm:$0xff]  ;;  %p4790_p3 = por %p4789_p2, %p4788_p1 }
  0x22   : > { %4346 = vmatprep.mubr.msk.f32.mxu0 %vm212_vm1, %v3712_v9  ;;  %4417 = vmatprep.subr.msk.mxu0 %vm285_vm0, %v3834_v10  ;;  %v5036_v21 = vld [vmem:[%s4959_s7 + $0x7a] sm:$0xff]  ;;  %v5039_v22 = vld [vmem:[%s4959_s7 + $0x24] sm:$0xff]  ;;  %v5050_v23 = vld [vmem:[%s4959_s7 + $0x2c] sm:$0xff]  ;;  %p4784_p0 = pneg %p4783_p13 }
  0x23   : > { %4265 = vmatprep.subr.msk.mxu1 %vm285_vm0, %v4977_v11  ;;  %4195 = vmatmul.mubr.msk.f32.gmra.mrb[2].mxu1 %vm212_vm1, %v3538_v12  ;;  %v5053_v24 = vld [vmem:[%s4959_s7 + $0x34] sm:$0xff]  ;;  %v5068_v26 = vld [vmem:[%s4959_s7 + $0x3c] sm:$0xff]  ;;  %v5076_v28 = vld [vmem:[%s4959_s7 + $0x44] sm:$0xff] }
  0x24   : > { %4347 = vmatmul.mubr.msk.f32.gmra.mrb[2].mxu0 %vm212_vm1, %v3713_v13  ;;  %4197 = vmatprep.mubr.msk.f32.mxu1 %vm212_vm1, %v3710_v5  ;;  %v5073_v27 = vld [vmem:[%s4959_s7 + $0x82] sm:$0xff]  ;;  %v5089_v29 = vld [vmem:[%s4959_s7 + $0x8a] sm:$0xff]  ;;  %v5095_v31 = vld [vmem:[%s4959_s7 + $0x92] sm:$0xff]  ;;  %p4791_p5 = pnand %p4790_p3, %p4784_p0 }
  0x25   : > { %4349 = vmatprep.mubr.msk.f32.mxu0 %vm212_vm1, %v4986_v14  ;;  %v5092_v30 = vld [vmem:[%s4959_s7 + $0x4c] sm:$0xff]  ;;  %v5098_v32 = vld [vmem:[%s4959_s7 + $0x54] sm:$0xff]  ;;  %v5112_v34 = vld [vmem:[%s4959_s7 + $0x5c] sm:$0xff] }
  0x26   : > { %v5109_v33 = vld [vmem:[%s4959_s7 + $0x9a] sm:$0xff]  ;;  %v5115_v35 = vld [vmem:[%s4959_s7 + $0xa2] sm:$0xff]  ;;  %v5129_v37 = vld [vmem:[%s4959_s7 + $0xaa] sm:$0xff] }
  0x27   : > { %4198 = vmatmul.mubr.msk.f32.gmra.mrb[4].mxu1 %vm212_vm1, %v3711_v7  ;;  %v5118_v36 = vld [vmem:[%s4959_s7 + $0x64] sm:$0xff]  ;;  %v5132_v38 = vld [vmem:[%s4959_s7 + $0x6c] sm:$0xff]  ;;  %v5138_v40 = vld [vmem:[%s4959_s7 + $0x74] sm:$0xff] }
  0x28   : > { %4350 = vmatmul.mubr.msk.f32.gmra.mrb[4].mxu0 %vm212_vm1, %v4997_v15  ;;  %4200 = vmatprep.mubr.msk.f32.mxu1 %vm212_vm1, %v3712_v9  ;;  %v5135_v39 = vld [vmem:[%s4959_s7 + $0xb2] sm:$0xff]  ;;  %v5149_v41 = vld [vmem:[%s4959_s7 + $0xba] sm:$0xff]  ;;  %v5156_v44 = vld [vmem:[%s4959_s7 + $0x84] sm:$0xff] }
  0x29   : > { %4352 = vmatprep.mubr.msk.f32.mxu0 %vm212_vm1, %v5000_v16  ;;  %v5152_v42 = vld [vmem:[%s4959_s7 + $0x7c] sm:$0xff]  ;;  %v160_v45 = vld [vmem:[%s4959_s7 + $0x8] sm:$0xff]  ;;  %v161_v47 = vld [vmem:[%s4959_s7 + $0x10] sm:$0xff] }
  0x2a   : > { %v159_v43 = vld [vmem:[%s4959_s7] sm:$0xff]  ;;  %v5167_v46 = vld [vmem:[%s4959_s7 + $0x8c] sm:$0xff]  ;;  %v5171_v48 = vld [vmem:[%s4959_s7 + $0x94] sm:$0xff] }
  0x2b   : > { %4201 = vmatmul.mubr.msk.f32.gmra.mrb[6].mxu1 %vm212_vm1, %v3713_v13  ;;  %v162_v50 = vld [vmem:[%s4959_s7 + $0x18] sm:$0xff]  ;;  %v5191_v52 = vld [vmem:[%s4959_s7 + $0x20] sm:$0xff]  ;;  %v5206_v54 = vld [vmem:[%s4959_s7 + $0x28] sm:$0xff] }
  0x2c   : > { %4353 = vmatmul.mubr.msk.f32.gmra.mrb[6].mxu0 %vm212_vm1, %v5009_v17  ;;  %4203 = vmatprep.mubr.msk.f32.mxu1 %vm212_vm1, %v4986_v14  ;;  %v5186_v51 = vld [vmem:[%s4959_s7 + $0x9c] sm:$0xff]  ;;  %v5194_v53 = vld [vmem:[%s4959_s7 + $0xa4] sm:$0xff]  ;;  %v5209_v55 = vld [vmem:[%s4959_s7 + $0xac] sm:$0xff] }
  0x2d   : > { %4355 = vmatprep.mubr.msk.f32.mxu0 %vm212_vm1, %v5012_v18  ;;  %v5212_v56 = vld [vmem:[%s4959_s7 + $0x30] sm:$0xff]  ;;  %v5226_v58 = vld [vmem:[%s4959_s7 + $0x38] sm:$0xff]  ;;  %v5232_v60 = vld [vmem:[%s4959_s7 + $0x40] sm:$0xff] }
  0x2e   : > { %v5215_v57 = vld [vmem:[%s4959_s7 + $0xb4] sm:$0xff]  ;;  %v5229_v59 = vld [vmem:[%s4959_s7 + $0xbc] sm:$0xff]  ;;  %v5235_v61 = vld [vmem:[%s4959_s7 + $0xc4] sm:$0xff] }
  0x2f   : > { %4204 = vmatmul.mubr.msk.f32.gmra.mrb[8].mxu1 %vm212_vm1, %v4997_v15  ;;  %v5246_v62 = vld [vmem:[%s4959_s7 + $0x48] sm:$0xff]  ;;  %v5252_v0 = vld [vmem:[%s4959_s7 + $0x50] sm:$0xff]  ;;  %v5266_v3 = vld [vmem:[%s4959_s7 + $0x58] sm:$0xff] }
  0x30   : > { %4356 = vmatmul.mubr.msk.f32.gmra.mrb[8].mxu0 %vm212_vm1, %v5022_v19  ;;  %4206 = vmatprep.mubr.msk.f32.mxu1 %vm212_vm1, %v5000_v16  ;;  %v5249_v63 = vld [vmem:[%s4959_s7 + $0xcc] sm:$0xff]  ;;  %v5255_v2 = vld [vmem:[%s4959_s7 + $0xd4] sm:$0xff]  ;;  %v5269_v4 = vld [vmem:[%s4959_s7 + $0xdc] sm:$0xff] }
  0x31   : > { %4358 = vmatprep.mubr.msk.f32.mxu0 %vm212_vm1, %v5025_v20  ;;  %5723 = vst [vmem:[#allocation5_spill] sm:$0xff] %v5249_v63  ;;  %5724 = vst [vmem:[#allocation6_spill] sm:$0xff] %v5255_v2  ;;  %v5272_v5 = vld [vmem:[%s4959_s7 + $0x60] sm:$0xff]  ;;  %v5283_v6 = vld [vmem:[%s4959_s7 + $0x68] sm:$0xff] }
  0x32   : > { %5725 = vst [vmem:[#allocation7_spill] sm:$0xff] %v5269_v4  ;;  %v5286_v7 = vld [vmem:[%s4959_s7 + $0x70] sm:$0xff]  ;;  %v5291_v8 = vld [vmem:[%s5716_s1 + $0x20] sm:$0xf]  ;;  %v5302_v9 = vld [vmem:[%s4959_s7 + $0x78] sm:$0xff] }
  0x33   : > { %4207 = vmatmul.mubr.msk.f32.gmra.mrb[10].mxu1 %vm212_vm1, %v5009_v17  ;;  %v5323_v12 = vld [vmem:[%s4959_s7 + $0x90] sm:$0xff]  ;;  %v5334_v13 = vld [vmem:[%s4959_s7 + $0x98] sm:$0xff] }
  0x34   : > { %4359 = vmatmul.mubr.msk.f32.gmra.mrb[10].mxu0 %vm212_vm1, %v5036_v21  ;;  %4209 = vmatprep.mubr.msk.f32.mxu1 %vm212_vm1, %v5012_v18 }
  0x35   : > { %4381 = vmatprep.mubr.msk.f32.mxu0 %vm212_vm1, %v5039_v22 }
  0x37   : > { %4210 = vmatmul.mubr.msk.f32.gmra.mrb[12].mxu1 %vm212_vm1, %v5022_v19 }
  0x38   : > { %4382 = vmatmul.mubr.msk.f32.vlgmr.msra.gmra.mrb[0].mxu0 %vm212_vm1, %v5050_v23  ;;  %4212 = vmatprep.mubr.msk.f32.mxu1 %vm212_vm1, %v5025_v20 }
  0x39   : > { %4418 = vmatpush3.msk.msra.mxu0 %vm285_vm0, %v3834_v10  ;;  %4384 = vmatprep.mubr.msk.f32.mxu0 %vm212_vm1, %v5053_v24  ;;  %v5307_v10 = vld [vmem:[%s4959_s7 + $0x80] sm:$0xff] }
  0x3a   : > { %4455 = vmatprep.subr.msk.mxu0 %vm285_vm0, %v5058_v25 }
  0x3b   : > { %4213 = vmatmul.mubr.msk.f32.gmra.mrb[14].mxu1 %vm212_vm1, %v5036_v21 }
  0x3c   : > { %4385 = vmatmul.mubr.msk.f32.gmra.mrb[2].mxu0 %vm212_vm1, %v5068_v26  ;;  %4215 = vmatprep.mubr.msk.f32.mxu1 %vm212_vm1, %v5073_v27 }
  0x3d   : > { %4387 = vmatprep.mubr.msk.f32.mxu0 %vm212_vm1, %v5076_v28 }
  0x3f   : > { %4216 = vmatmul.mubr.msk.f32.gmra.mrb[16].mxu1 %vm212_vm1, %v5089_v29 }
  0x40   : > { %4388 = vmatmul.mubr.msk.f32.gmra.mrb[4].mxu0 %vm212_vm1, %v5092_v30  ;;  %4218 = vmatprep.mubr.msk.f32.mxu1 %vm212_vm1, %v5095_v31 }
  0x41   : > { %4390 = vmatprep.mubr.msk.f32.mxu0 %vm212_vm1, %v5098_v32 }
  0x43   : > { %4219 = vmatmul.mubr.msk.f32.gmra.mrb[18].mxu1 %vm212_vm1, %v5109_v33 }
  0x44   : > { %4391 = vmatmul.mubr.msk.f32.gmra.mrb[6].mxu0 %vm212_vm1, %v5112_v34  ;;  %4221 = vmatprep.mubr.msk.f32.mxu1 %vm212_vm1, %v5115_v35 }
  0x45   : > { %4393 = vmatprep.mubr.msk.f32.mxu0 %vm212_vm1, %v5118_v36 }
  0x47   : > { %4222 = vmatmul.mubr.msk.f32.gmra.mrb[20].mxu1 %vm212_vm1, %v5129_v37 }
  0x48   : > { %4394 = vmatmul.mubr.msk.f32.gmra.mrb[8].mxu0 %vm212_vm1, %v5132_v38  ;;  %4224 = vmatprep.mubr.msk.f32.mxu1 %vm212_vm1, %v5135_v39 }
  0x49   : > { %4396 = vmatprep.mubr.msk.f32.mxu0 %vm212_vm1, %v5138_v40 }
  0x4b   : > { %4225 = vmatmul.mubr.msk.f32.gmra.mrb[22].mxu1 %vm212_vm1, %v5149_v41 }
  0x4c   : > { %4397 = vmatmul.mubr.msk.f32.gmra.mrb[10].mxu0 %vm212_vm1, %v5152_v42  ;;  %4229 = vmatprep.mubr.msk.f32.mxu1 %vm212_vm1, %v159_v43  ;;  %v5348_v43 = vld [vmem:[%s4959_s7 + $0xa8] sm:$0xff] }
  0x4d   : > { %4399 = vmatprep.mubr.msk.f32.mxu0 %vm212_vm1, %v5156_v44 }
  0x4f   : > { %4230 = vmatmul.mubr.msk.f32.vlgmr.msra.gmra.mrb[0].mxu1 %vm212_vm1, %v160_v45  ;;  %v5351_v45 = vld [vmem:[%s4959_s7 + $0xb0] sm:$0xff] }
  0x50   : > { %4400 = vmatmul.mubr.msk.f32.gmra.mrb[12].mxu0 %vm212_vm1, %v5167_v46  ;;  %4266 = vmatpush3.msk.msra.mxu1 %vm285_vm0, %v4977_v11  ;;  %v5320_v11 = vld [vmem:[%s4959_s7 + $0x88] sm:$0xff] }
  0x51   : > { %4232 = vmatprep.mubr.msk.f32.mxu1 %vm212_vm1, %v161_v47  ;;  %4402 = vmatprep.mubr.msk.f32.mxu0 %vm212_vm1, %v5171_v48  ;;  %v5362_v47 = vld [vmem:[%s4959_s7 + $0xb8] sm:$0xff] }
  0x52   : > { %4303 = vmatprep.subr.msk.mxu1 %vm285_vm0, %v5176_v49 }
  0x53   : > { %4233 = vmatmul.mubr.msk.f32.gmra.mrb[2].mxu1 %vm212_vm1, %v162_v50  ;;  %v3610_v50 = vld [vmem:[%s4959_s7 + $0x4] sm:$0xff] }
  0x54   : > { %4403 = vmatmul.mubr.msk.f32.gmra.mrb[14].mxu0 %vm212_vm1, %v5186_v51  ;;  %4235 = vmatprep.mubr.msk.f32.mxu1 %vm212_vm1, %v5191_v52 }
  0x55   : > { %4405 = vmatprep.mubr.msk.f32.mxu0 %vm212_vm1, %v5194_v53 }
  0x57   : > { %4236 = vmatmul.mubr.msk.f32.gmra.mrb[4].mxu1 %vm212_vm1, %v5206_v54 }
  0x58   : > { %4406 = vmatmul.mubr.msk.f32.gmra.mrb[16].mxu0 %vm212_vm1, %v5209_v55  ;;  %4238 = vmatprep.mubr.msk.f32.mxu1 %vm212_vm1, %v5212_v56 }
  0x59   : > { %4408 = vmatprep.mubr.msk.f32.mxu0 %vm212_vm1, %v5215_v57 }
  0x5b   : > { %4239 = vmatmul.mubr.msk.f32.gmra.mrb[6].mxu1 %vm212_vm1, %v5226_v58 }
  0x5c   : > { %4409 = vmatmul.mubr.msk.f32.gmra.mrb[18].mxu0 %vm212_vm1, %v5229_v59  ;;  %4241 = vmatprep.mubr.msk.f32.mxu1 %vm212_vm1, %v5232_v60 }
  0x5d   : > { %4411 = vmatprep.mubr.msk.f32.mxu0 %vm212_vm1, %v5235_v61 }
  0x5f   : > { %4242 = vmatmul.mubr.msk.f32.gmra.mrb[8].mxu1 %vm212_vm1, %v5246_v62 }
  0x60   : > { %4412 = vmatmul.mubr.msk.f32.gmra.mrb[20].mxu0 %vm212_vm1, %v5249_v63  ;;  %4244 = vmatprep.mubr.msk.f32.mxu1 %vm212_vm1, %v5252_v0  ;;  %v5384_v63 = vld [vmem:[%s4959_s7 + $0xc0] sm:$0xff] }
  0x61   : > { %4414 = vmatprep.mubr.msk.f32.mxu0 %vm212_vm1, %v5255_v2  ;;  %v3612_v2 = vld [vmem:[%s4959_s7 + $0x14] sm:$0xff] }
  0x63   : > { %4245 = vmatmul.mubr.msk.f32.gmra.mrb[10].mxu1 %vm212_vm1, %v5266_v3 }
  0x64   : > { %4415 = vmatmul.mubr.msk.f32.gmra.mrb[22].mxu0 %vm212_vm1, %v5269_v4  ;;  %4247 = vmatprep.mubr.msk.f32.mxu1 %vm212_vm1, %v5272_v5  ;;  %v3611_v4 = vld [vmem:[%s4959_s7 + $0xc] sm:$0xff] }
  0x65   : > { %4419 = vmatprep.mubr.msk.f32.mxu0 %vm212_vm1, %v5232_v60 }
  0x67   : > { %4248 = vmatmul.mubr.msk.f32.gmra.mrb[12].mxu1 %vm212_vm1, %v5283_v6 }
  0x68   : > { %4420 = vmatmul.mubr.msk.f32.vlgmr.msra.gmra.mrb[0].mxu0 %vm212_vm1, %v5246_v62  ;;  %4250 = vmatprep.mubr.msk.f32.mxu1 %vm212_vm1, %v5286_v7 }
  0x69   : > { %4456 = vmatpush3.msk.msra.mxu0 %vm285_vm0, %v5058_v25  ;;  %4422 = vmatprep.mubr.msk.f32.mxu0 %vm212_vm1, %v5252_v0  ;;  %v5337_v25 = vld [vmem:[%s4959_s7 + $0xa0] sm:$0xff] }
  0x6a   : > { %4493 = vmatprep.subr.msk.mxu0 %vm285_vm0, %v5291_v8 }
  0x6b   : > { %4251 = vmatmul.mubr.msk.f32.gmra.mrb[14].mxu1 %vm212_vm1, %v5302_v9 }
  0x6c   : > { %4423 = vmatmul.mubr.msk.f32.gmra.mrb[2].mxu0 %vm212_vm1, %v5266_v3  ;;  %4253 = vmatprep.mubr.msk.f32.mxu1 %vm212_vm1, %v5307_v10 }
  0x6d   : > { %4425 = vmatprep.mubr.msk.f32.mxu0 %vm212_vm1, %v5272_v5 }
  0x6f   : > { %4254 = vmatmul.mubr.msk.f32.gmra.mrb[16].mxu1 %vm212_vm1, %v5320_v11 }
  0x70   : > { %4426 = vmatmul.mubr.msk.f32.gmra.mrb[4].mxu0 %vm212_vm1, %v5283_v6  ;;  %4256 = vmatprep.mubr.msk.f32.mxu1 %vm212_vm1, %v5323_v12 }
  0x71   : > { %4428 = vmatprep.mubr.msk.f32.mxu0 %vm212_vm1, %v5286_v7 }
  0x73   : > { %4257 = vmatmul.mubr.msk.f32.gmra.mrb[18].mxu1 %vm212_vm1, %v5334_v13 }
  0x74   : > { %4429 = vmatmul.mubr.msk.f32.gmra.mrb[6].mxu0 %vm212_vm1, %v5302_v9  ;;  %4259 = vmatprep.mubr.msk.f32.mxu1 %vm212_vm1, %v5337_v25 }
  0x75   : > { %4431 = vmatprep.mubr.msk.f32.mxu0 %vm212_vm1, %v5307_v10 }
  0x77   : > { %4260 = vmatmul.mubr.msk.f32.gmra.mrb[20].mxu1 %vm212_vm1, %v5348_v43 }
  0x78   : > { %4432 = vmatmul.mubr.msk.f32.gmra.mrb[8].mxu0 %vm212_vm1, %v5320_v11  ;;  %4262 = vmatprep.mubr.msk.f32.mxu1 %vm212_vm1, %v5351_v45 }
  0x79   : > { %4434 = vmatprep.mubr.msk.f32.mxu0 %vm212_vm1, %v5323_v12 }
  0x7b   : > { %4263 = vmatmul.mubr.msk.f32.gmra.mrb[22].mxu1 %vm212_vm1, %v5362_v47 }
  0x7c   : > { %4435 = vmatmul.mubr.msk.f32.gmra.mrb[10].mxu0 %vm212_vm1, %v5334_v13  ;;  %4267 = vmatprep.mubr.msk.f32.mxu1 %vm212_vm1, %v3610_v50  ;;  %v3613_v50 = vld [vmem:[%s4959_s7 + $0x1c] sm:$0xff] }
  0x7d   : > { %4437 = vmatprep.mubr.msk.f32.mxu0 %vm212_vm1, %v5337_v25 }
  0x7f   : > { %4268 = vmatmul.mubr.msk.f32.vlgmr.msra.gmra.mrb[0].mxu1 %vm212_vm1, %v3611_v4  ;;  %v3830_v4 = vld [vmem:[%s4959_s7 + $0xe0] sm:$0xff] }
  0x80   : > { %4438 = vmatmul.mubr.msk.f32.gmra.mrb[12].mxu0 %vm212_vm1, %v5348_v43  ;;  %4304 = vmatpush3.msk.msra.mxu1 %vm285_vm0, %v5176_v49  ;;  %v5396_v49 = vld [vmem:[%s4959_s7 + $0xc8] sm:$0xff] }
  0x81   : > { %4270 = vmatprep.mubr.msk.f32.mxu1 %vm212_vm1, %v3612_v2  ;;  %4440 = vmatprep.mubr.msk.f32.mxu0 %vm212_vm1, %v5351_v45  ;;  %v5399_v2 = vld [vmem:[%s4959_s7 + $0xd0] sm:$0xff] }
  0x82   : > { %4531 = vmatprep.subr.msk.mxu1 %vm285_vm0, %v4938_v1 }
  0x83   : > { %4271 = vmatmul.mubr.msk.f32.gmra.mrb[2].mxu1 %vm212_vm1, %v3613_v50  ;;  %v3832_v50 = vld [vmem:[%s4959_s7 + $0xf0] sm:$0xff] }
  0x84   : > { %4441 = vmatmul.mubr.msk.f32.gmra.mrb[14].mxu0 %vm212_vm1, %v5362_v47  ;;  %4273 = vmatprep.mubr.msk.f32.mxu1 %vm212_vm1, %v5039_v22  ;;  %v5410_v22 = vld [vmem:[%s4959_s7 + $0xd8] sm:$0xff] }
  0x85   : > { %4443 = vmatprep.mubr.msk.f32.mxu0 %vm212_vm1, %v5384_v63 }
  0x87   : > { %4274 = vmatmul.mubr.msk.f32.gmra.mrb[4].mxu1 %vm212_vm1, %v5050_v23  ;;  %v3831_v23 = vld [vmem:[%s4959_s7 + $0xe8] sm:$0xff] }
  0x88   : > { %4444 = vmatmul.mubr.msk.f32.gmra.mrb[16].mxu0 %vm212_vm1, %v5396_v49  ;;  %4276 = vmatprep.mubr.msk.f32.mxu1 %vm212_vm1, %v5053_v24  ;;  %v3833_v24 = vld [vmem:[%s4959_s7 + $0xf8] sm:$0xff] }
  0x89   : > { %4446 = vmatprep.mubr.msk.f32.mxu0 %vm212_vm1, %v5399_v2 }
  0x8b   : > { %4277 = vmatmul.mubr.msk.f32.gmra.mrb[6].mxu1 %vm212_vm1, %v5068_v26  ;;  %v5727_v26 = vld [vmem:[#allocation6_spill] sm:$0xff] }
  0x8c   : > { %4447 = vmatmul.mubr.msk.f32.gmra.mrb[18].mxu0 %vm212_vm1, %v5410_v22  ;;  %4279 = vmatprep.mubr.msk.f32.mxu1 %vm212_vm1, %v5076_v28 }
  0x8d   : > { %4449 = vmatprep.mubr.msk.f32.mxu0 %vm212_vm1, %v3830_v4 }
  0x8f   : > { %4280 = vmatmul.mubr.msk.f32.gmra.mrb[8].mxu1 %vm212_vm1, %v5092_v30 }
  0x90   : > { %4450 = vmatmul.mubr.msk.f32.gmra.mrb[20].mxu0 %vm212_vm1, %v3831_v23  ;;  %4282 = vmatprep.mubr.msk.f32.mxu1 %vm212_vm1, %v5098_v32 }
  0x91   : > { %4452 = vmatprep.mubr.msk.f32.mxu0 %vm212_vm1, %v3832_v50 }
  0x93   : > { %4283 = vmatmul.mubr.msk.f32.gmra.mrb[10].mxu1 %vm212_vm1, %v5112_v34 }
  0x94   : > { %4453 = vmatmul.mubr.msk.f32.gmra.mrb[22].mxu0 %vm212_vm1, %v3833_v24  ;;  %4285 = vmatprep.mubr.msk.f32.mxu1 %vm212_vm1, %v5118_v36 }
  0x95   : > { %4457 = vmatprep.mubr.msk.f32.mxu0 %vm212_vm1, %v4986_v14  ;;  %v5497_v14 = vld [vmem:[%s4959_s7 + $0xc2] sm:$0xff] }
  0x97   : > { %4286 = vmatmul.mubr.msk.f32.gmra.mrb[12].mxu1 %vm212_vm1, %v5132_v38 }
  0x98   : > { %4458 = vmatmul.mubr.msk.f32.vlgmr.msra.gmra.mrb[0].mxu0 %vm212_vm1, %v4997_v15  ;;  %4288 = vmatprep.mubr.msk.f32.mxu1 %vm212_vm1, %v5138_v40  ;;  %v5511_v15 = vld [vmem:[%s4959_s7 + $0xd2] sm:$0xff] }
  0x99   : > { %4494 = vmatpush3.msk.msra.mxu0 %vm285_vm0, %v5291_v8  ;;  %4460 = vmatprep.mubr.msk.f32.mxu0 %vm212_vm1, %v5000_v16  ;;  %v5522_v16 = vld [vmem:[%s4959_s7 + $0xda] sm:$0xff] }
  0x9b   : > { %4289 = vmatmul.mubr.msk.f32.gmra.mrb[14].mxu1 %vm212_vm1, %v5152_v42 }
  0x9c   : > { %4461 = vmatmul.mubr.msk.f32.gmra.mrb[2].mxu0 %vm212_vm1, %v5009_v17  ;;  %4291 = vmatprep.mubr.msk.f32.mxu1 %vm212_vm1, %v5156_v44  ;;  %v3880_v17 = vld [vmem:[%s4959_s7 + $0xe2] sm:$0xff] }
  0x9d   : > { %4463 = vmatprep.mubr.msk.f32.mxu0 %vm212_vm1, %v5012_v18  ;;  %v3881_v18 = vld [vmem:[%s4959_s7 + $0xea] sm:$0xff] }
  0x9f   : > { %4292 = vmatmul.mubr.msk.f32.gmra.mrb[16].mxu1 %vm212_vm1, %v5167_v46 }
  0xa0   : > { %4464 = vmatmul.mubr.msk.f32.gmra.mrb[4].mxu0 %vm212_vm1, %v5022_v19  ;;  %4294 = vmatprep.mubr.msk.f32.mxu1 %vm212_vm1, %v5171_v48  ;;  %v3882_v19 = vld [vmem:[%s4959_s7 + $0xf2] sm:$0xff] }
  0xa1   : > { %4466 = vmatprep.mubr.msk.f32.mxu0 %vm212_vm1, %v5025_v20  ;;  %v3883_v20 = vld [vmem:[%s4959_s7 + $0xfa] sm:$0xff] }
  0xa3   : > { %4295 = vmatmul.mubr.msk.f32.gmra.mrb[18].mxu1 %vm212_vm1, %v5186_v51 }
  0xa4   : > { %4467 = vmatmul.mubr.msk.f32.gmra.mrb[6].mxu0 %vm212_vm1, %v5036_v21  ;;  %4297 = vmatprep.mubr.msk.f32.mxu1 %vm212_vm1, %v5194_v53  ;;  %v5726_v21 = vld [vmem:[#allocation5_spill] sm:$0xff] }
  0xa5   : > { %4469 = vmatprep.mubr.msk.f32.mxu0 %vm212_vm1, %v5073_v27 }
  0xa7   : > { %4298 = vmatmul.mubr.msk.f32.gmra.mrb[20].mxu1 %vm212_vm1, %v5209_v55 }
  0xa8   : > { %4470 = vmatmul.mubr.msk.f32.gmra.mrb[8].mxu0 %vm212_vm1, %v5089_v29  ;;  %4300 = vmatprep.mubr.msk.f32.mxu1 %vm212_vm1, %v5215_v57 }
  0xa9   : > { %4472 = vmatprep.mubr.msk.f32.mxu0 %vm212_vm1, %v5095_v31 }
  0xab   : > { %4301 = vmatmul.mubr.msk.f32.gmra.mrb[22].mxu1 %vm212_vm1, %v5229_v59 }
  0xac   : > { %4473 = vmatmul.mubr.msk.f32.gmra.mrb[10].mxu0 %vm212_vm1, %v5109_v33  ;;  %4305 = vmatprep.mubr.msk.f32.mxu1 %vm212_vm1, %v5191_v52 }
  0xad   : > { %4475 = vmatprep.mubr.msk.f32.mxu0 %vm212_vm1, %v5115_v35 }
  0xaf   : > { %4306 = vmatmul.mubr.msk.f32.vlgmr.msra.gmra.mrb[0].mxu1 %vm212_vm1, %v5206_v54 }
  0xb0   : > { %4476 = vmatmul.mubr.msk.f32.gmra.mrb[12].mxu0 %vm212_vm1, %v5129_v37  ;;  %4532 = vmatpush3.msk.msra.mxu1 %vm285_vm0, %v4938_v1  ;;  %v5508_v1 = vld [vmem:[%s4959_s7 + $0xca] sm:$0xff] }
  0xb1   : > { %4308 = vmatprep.mubr.msk.f32.mxu1 %vm212_vm1, %v5212_v56  ;;  %4478 = vmatprep.mubr.msk.f32.mxu0 %vm212_vm1, %v5135_v39 }
  0xb3   : > { %4309 = vmatmul.mubr.msk.f32.gmra.mrb[2].mxu1 %vm212_vm1, %v5226_v58 }
  0xb4   : > { %4479 = vmatmul.mubr.msk.f32.gmra.mrb[14].mxu0 %vm212_vm1, %v5149_v41  ;;  %4311 = vmatprep.mubr.msk.f32.mxu1 %vm212_vm1, %v5232_v60 }
  0xb5   : > { %4481 = vmatprep.mubr.msk.f32.mxu0 %vm212_vm1, %v5497_v14 }
  0xb7   : > { %4312 = vmatmul.mubr.msk.f32.gmra.mrb[4].mxu1 %vm212_vm1, %v5246_v62 }
  0xb8   : > { %4482 = vmatmul.mubr.msk.f32.gmra.mrb[16].mxu0 %vm212_vm1, %v5508_v1  ;;  %4314 = vmatprep.mubr.msk.f32.mxu1 %vm212_vm1, %v5252_v0 }
  0xb9   : > { %4484 = vmatprep.mubr.msk.f32.mxu0 %vm212_vm1, %v5511_v15 }
  0xbb   : > { %4315 = vmatmul.mubr.msk.f32.gmra.mrb[6].mxu1 %vm212_vm1, %v5266_v3 }
  0xbc   : > { %4485 = vmatmul.mubr.msk.f32.gmra.mrb[18].mxu0 %vm212_vm1, %v5522_v16  ;;  %4317 = vmatprep.mubr.msk.f32.mxu1 %vm212_vm1, %v5272_v5 }
  0xbd   : > { %4487 = vmatprep.mubr.msk.f32.mxu0 %vm212_vm1, %v3880_v17 }
  0xbf   : > { %4318 = vmatmul.mubr.msk.f32.gmra.mrb[8].mxu1 %vm212_vm1, %v5283_v6 }
  0xc0   : > { %4488 = vmatmul.mubr.msk.f32.gmra.mrb[20].mxu0 %vm212_vm1, %v3881_v18  ;;  %4320 = vmatprep.mubr.msk.f32.mxu1 %vm212_vm1, %v5286_v7 }
  0xc1   : > { %4490 = vmatprep.mubr.msk.f32.mxu0 %vm212_vm1, %v3882_v19 }
  0xc3   : > { %4321 = vmatmul.mubr.msk.f32.gmra.mrb[10].mxu1 %vm212_vm1, %v5302_v9 }
  0xc4   : > { %4491 = vmatmul.mubr.msk.f32.gmra.mrb[22].mxu0 %vm212_vm1, %v3883_v20  ;;  %4323 = vmatprep.mubr.msk.f32.mxu1 %vm212_vm1, %v5307_v10 }
  0xc5   : > { %4495 = vmatprep.mubr.msk.f32.mxu0 %vm212_vm1, %v5076_v28  ;;  %v5728_v28 = vld [vmem:[#allocation7_spill] sm:$0xff] }
  0xc7   : > { %4324 = vmatmul.mubr.msk.f32.gmra.mrb[12].mxu1 %vm212_vm1, %v5320_v11 }
  0xc8   : > { %4496 = vmatmul.mubr.msk.f32.vlgmr.msra.gmra.mrb[0].mxu0 %vm212_vm1, %v5092_v30  ;;  %4326 = vmatprep.mubr.msk.f32.mxu1 %vm212_vm1, %v5323_v12  ;;  %v3932_v30 = vld [vmem:[%s4959_s7 + $0xf4] sm:$0xff] }
  0xc9   : > { %4498 = vmatprep.mubr.msk.f32.mxu0 %vm212_vm1, %v5098_v32 }
  0xcb   : > { %4327 = vmatmul.mubr.msk.f32.gmra.mrb[14].mxu1 %vm212_vm1, %v5334_v13 }
  0xcc   : > { %4499 = vmatmul.mubr.msk.f32.gmra.mrb[2].mxu0 %vm212_vm1, %v5112_v34  ;;  %4329 = vmatprep.mubr.msk.f32.mxu1 %vm212_vm1, %v5337_v25 }
  0xcd   : > { %4501 = vmatprep.mubr.msk.f32.mxu0 %vm212_vm1, %v5118_v36 }
  0xcf   : > { %4330 = vmatmul.mubr.msk.f32.gmra.mrb[16].mxu1 %vm212_vm1, %v5348_v43 }
  0xd0   : > { %4502 = vmatmul.mubr.msk.f32.gmra.mrb[4].mxu0 %vm212_vm1, %v5132_v38  ;;  %4332 = vmatprep.mubr.msk.f32.mxu1 %vm212_vm1, %v5351_v45 }
  0xd1   : > { %4504 = vmatprep.mubr.msk.f32.mxu0 %vm212_vm1, %v5138_v40 }
  0xd3   : > { %4333 = vmatmul.mubr.msk.f32.gmra.mrb[18].mxu1 %vm212_vm1, %v5362_v47 }
  0xd4   : > { %4505 = vmatmul.mubr.msk.f32.gmra.mrb[6].mxu0 %vm212_vm1, %v5152_v42  ;;  %4335 = vmatprep.mubr.msk.f32.mxu1 %vm212_vm1, %v5384_v63 }
  0xd5   : > { %4507 = vmatprep.mubr.msk.f32.mxu0 %vm212_vm1, %v5156_v44 }
  0xd7   : > { %4336 = vmatmul.mubr.msk.f32.gmra.mrb[20].mxu1 %vm212_vm1, %v5396_v49 }
  0xd8   : > { %4508 = vmatmul.mubr.msk.f32.gmra.mrb[8].mxu0 %vm212_vm1, %v5167_v46  ;;  %4338 = vmatprep.mubr.msk.f32.mxu1 %vm212_vm1, %v5399_v2 }
  0xd9   : > { %4510 = vmatprep.mubr.msk.f32.mxu0 %vm212_vm1, %v5171_v48 }
  0xdb   : > { %4339 = vmatmul.mubr.msk.f32.gmra.mrb[22].mxu1 %vm212_vm1, %v5410_v22 }
  0xdc   : > { %4511 = vmatmul.mubr.msk.f32.gmra.mrb[10].mxu0 %vm212_vm1, %v5186_v51  ;;  %4361 = vmatprep.mubr.msk.f32.mxu1 %vm212_vm1, %v5073_v27  ;;  %v3930_v27 = vld [vmem:[%s4959_s7 + $0xe4] sm:$0xff] }
  0xdd   : > { %4513 = vmatprep.mubr.msk.f32.mxu0 %vm212_vm1, %v5194_v53 }
  0xdf   : > { %4362 = vmatmul.mubr.msk.f32.vlgmr.msra.gmra.mrb[12].mxu1 %vm212_vm1, %v5089_v29  ;;  %v3931_v29 = vld [vmem:[%s4959_s7 + $0xec] sm:$0xff] }
  0xe0   : > { %4514 = vmatmul.mubr.msk.f32.gmra.mrb[12].mxu0 %vm212_vm1, %v5209_v55  ;;  %4364 = vmatprep.mubr.msk.f32.mxu1 %vm212_vm1, %v5095_v31  ;;  %v3933_v31 = vld [vmem:[%s4959_s7 + $0xfc] sm:$0xff]  ;;  %s5668_s7 = scalar_lea.hbm %s5717_s2, %s3961_s30 }
  0xe1   : > { %4516 = vmatprep.mubr.msk.f32.mxu0 %vm212_vm1, %v5215_v57 }
  0xe3   : > { %4365 = vmatmul.mubr.msk.f32.gmra.mrb[14].mxu1 %vm212_vm1, %v5109_v33 }
  0xe4   : > { %4517 = vmatmul.mubr.msk.f32.gmra.mrb[14].mxu0 %vm212_vm1, %v5229_v59  ;;  %4367 = vmatprep.mubr.msk.f32.mxu1 %vm212_vm1, %v5115_v35 }
  0xe5   : > { %4519 = vmatprep.mubr.msk.f32.mxu0 %vm212_vm1, %v5235_v61 }
  0xe7   : > { %4368 = vmatmul.mubr.msk.f32.gmra.mrb[16].mxu1 %vm212_vm1, %v5129_v37  ;;  %v2920_v37 = vlaneseq }
  0xe8   : > { %4520 = vmatmul.mubr.msk.f32.gmra.mrb[16].mxu0 %vm212_vm1, %v5726_v21  ;;  %4370 = vmatprep.mubr.msk.f32.mxu1 %vm212_vm1, %v5135_v39 }
  0xe9   : > { %4522 = vmatprep.mubr.msk.f32.mxu0 %vm212_vm1, %v5727_v26  ;;  %v5640_v40 = vshrl.u32 %v2920_v37, 7 }
  0xeb   : > { %4371 = vmatmul.mubr.msk.f32.gmra.mrb[18].mxu1 %vm212_vm1, %v5149_v41  ;;  %v2922_v44 = vadd.s32 8, %v5640_v40  ;;  %v2924_v48 = vadd.s32 24, %v5640_v40  ;;  %v2926_v56 = vadd.s32 40, %v5640_v40  ;;  %v2928_v61 = vadd.s32 56, %v5640_v40 }
  0xec   : > { %4523 = vmatmul.mubr.msk.f32.gmra.mrb[18].mxu0 %vm212_vm1, %v5728_v28  ;;  %4373 = vmatprep.mubr.msk.f32.mxu1 %vm212_vm1, %v5497_v14  ;;  %v2930_v12 = vadd.s32 72, %v5640_v40  ;;  %v2934_v28 = vadd.s32 104, %v5640_v40 }
  0xed   : > { %4525 = vmatprep.mubr.msk.f32.mxu0 %vm212_vm1, %v3930_v27  ;;  %v2956_v52 = vand.u32 15, %v2922_v44  ;;  %v2970_v54 = vand.u32 15, %v2924_v48  ;;  %v2984_v5 = vand.u32 15, %v2926_v56  ;;  %v2998_v11 = vand.u32 15, %v2928_v61 }
  0xee   : > { %v3012_v50 = vand.u32 15, %v2930_v12  ;;  %v3040_v48 = vand.u32 15, %v2934_v28 }
  0xef   : > { %4374 = vmatmul.mubr.msk.f32.gmra.mrb[20].mxu1 %vm212_vm1, %v5508_v1  ;;  %vm3234_vm2 = vcmp.lt.s32.totalorder %v2956_v52, 12  ;;  %vm3236_vm3 = vcmp.lt.s32.totalorder %v2970_v54, 12  ;;  %vm3238_vm4 = vcmp.lt.s32.totalorder %v2984_v5, 12  ;;  %vm3240_vm5 = vcmp.lt.s32.totalorder %v2998_v11, 12 }
  0xf0   : > { %4526 = vmatmul.mubr.msk.f32.gmra.mrb[20].mxu0 %vm212_vm1, %v3931_v29  ;;  %4376 = vmatprep.mubr.msk.f32.mxu1 %vm212_vm1, %v5511_v15  ;;  %vm3242_vm6 = vcmp.lt.s32.totalorder %v3012_v50, 12  ;;  %vm3246_vm8 = vcmp.lt.s32.totalorder %v3040_v48, 12 }
  0xf1   : > { %4528 = vmatprep.mubr.msk.f32.mxu0 %vm212_vm1, %v3932_v30 }
  0xf3   : > { %4377 = vmatmul.mubr.msk.f32.gmra.mrb[22].mxu1 %vm212_vm1, %v5522_v16  ;;  %v2932_v16 = vadd.s32 88, %v5640_v40 }
  0xf4   : > { %4529 = vmatmul.mubr.msk.f32.gmra.mrb[22].mxu0 %vm212_vm1, %v3933_v31 }
 0x182   : > { %v4307_v32 = vpop.f32.mrb[0].mxu1 }
 0x183   : > { %v1216_v33 = vpop.f32.mrb[1].mxu1 }
 0x186   : > { %v4310_v34 = vpop.f32.mrb[2].mxu1 }
 0x187   : > { %v1226_v35 = vpop.f32.mrb[3].mxu1 }
 0x18a   : > { %v4313_v36 = vpop.f32.mrb[4].mxu1 }
 0x18b   : > { %v1236_v38 = vpop.f32.mrb[5].mxu1 }
 0x18e   : > { %v4316_v39 = vpop.f32.mrb[6].mxu1 }
 0x18f   : > { %v1246_v41 = vpop.f32.mrb[7].mxu1 }
 0x192   : > { %v4319_v42 = vpop.f32.mrb[8].mxu1 }
 0x193   : > { %v5643_v46 = vpop.f32.mrb[9].mxu1 }
 0x196   : > { %v5646_v51 = vpop.f32.mrb[10].mxu1 }
 0x197   : > { %v5648_v53 = vpop.f32.mrb[11].mxu1 }
 0x19b   : > { %v4497_v55 = vpop.f32.mrb[0].mxu0 }
 0x19c   : > { %v4533_v57 = vadd.f32 %v4497_v55, %v4307_v32  ;;  %v2777_v58 = vpop.f32.mrb[1].mxu0 }
 0x19d   : > { %v4534_v59 = vadd.f32 %v2777_v58, %v1216_v33  ;;  %v3026_v33 = vand.u32 15, %v2932_v16 }
 0x19e   : > { %v3306_v60 = vsel %vm3234_vm2, %v4533_v57, 0.0 }
 0x19f   : > { %v3360_v62 = vmul.f32 %v4533_v57, %v3306_v60  ;;  %v3329_v63 = vadd.f32 %v4534_v59, %v3306_v60  ;;  %v3359_v0 = vmul.f32 %v4534_v59, %v4534_v59  ;;  %v4500_v3 = vpop.f32.mrb[2].mxu0  ;;  %vm3244_vm7 = vcmp.lt.s32.totalorder %v3026_v33, 12 }
 0x1a0   : > { %v4535_v6 = vadd.f32 %v4500_v3, %v4310_v34  ;;  %v2787_v7 = vpop.f32.mrb[3].mxu0 }
 0x1a1   : > { %v3383_v8 = vadd.f32 %v3360_v62, %v3359_v0  ;;  %v4536_v9 = vadd.f32 %v2787_v7, %v1226_v35  ;;  %v2938_v7 = vadd.s32 136, %v5640_v40 }
 0x1a2   : > { %v3308_v10 = vsel %vm3236_vm3, %v4535_v6, 0.0 }
 0x1a3   : > { %v3330_v13 = vadd.f32 %v4536_v9, %v3329_v63  ;;  %v3361_v25 = vmul.f32 %v4536_v9, %v4536_v9  ;;  %v4503_v43 = vpop.f32.mrb[4].mxu0  ;;  %v3362_v49 = vmul.f32 %v4535_v6, %v3308_v10 }
 0x1a4   : > { %v4537_v45 = vadd.f32 %v4503_v43, %v4313_v36  ;;  %v2797_v47 = vpop.f32.mrb[5].mxu0 }
 0x1a5   : > { %v3384_v2 = vadd.f32 %v3383_v8, %v3361_v25  ;;  %v4538_v22 = vadd.f32 %v2797_v47, %v1236_v38  ;;  %v3331_v4 = vadd.f32 %v3330_v13, %v3308_v10 }
 0x1a6   : > { %v3310_v23 = vsel %vm3238_vm4, %v4537_v45, 0.0 }
 0x1a7   : > { %v3332_v24 = vadd.f32 %v4538_v22, %v3331_v4  ;;  %v3363_v14 = vmul.f32 %v4538_v22, %v4538_v22  ;;  %v3385_v1 = vadd.f32 %v3384_v2, %v3362_v49  ;;  %v4506_v15 = vpop.f32.mrb[6].mxu0  ;;  %v3364_v19 = vmul.f32 %v4537_v45, %v3310_v23 }
 0x1a8   : > { %v4539_v17 = vadd.f32 %v4506_v15, %v4316_v39  ;;  %v2807_v18 = vpop.f32.mrb[7].mxu0  ;;  %v3068_v22 = vand.u32 15, %v2938_v7 }
 0x1a9   : > { %v3386_v20 = vadd.f32 %v3385_v1, %v3363_v14  ;;  %v4540_v21 = vadd.f32 %v2807_v18, %v1246_v41  ;;  %v3333_v26 = vadd.f32 %v3332_v24, %v3310_v23  ;;  %v2936_v41 = vadd.s32 120, %v5640_v40 }
 0x1aa   : > { %v3312_v27 = vsel %vm3240_vm5, %v4539_v17, 0.0  ;;  %v2942_v18 = vadd.s32 168, %v5640_v40  ;;  %vm3250_vm10 = vcmp.lt.s32.totalorder %v3068_v22, 12 }
 0x1ab   : > { %v3334_v29 = vadd.f32 %v4540_v21, %v3333_v26  ;;  %v3365_v30 = vmul.f32 %v4540_v21, %v4540_v21  ;;  %v3387_v31 = vadd.f32 %v3386_v20, %v3364_v19  ;;  %v4509_v32 = vpop.f32.mrb[8].mxu0  ;;  %v3366_v36 = vmul.f32 %v4539_v17, %v3312_v27 }
 0x1ac   : > { %v4541_v34 = vadd.f32 %v4509_v32, %v4319_v42  ;;  %v2817_v35 = vpop.f32.mrb[9].mxu0 }
 0x1ad   : > { %v3388_v37 = vadd.f32 %v3387_v31, %v3365_v30  ;;  %v4542_v38 = vadd.f32 %v2817_v35, %v5643_v46  ;;  %v3335_v39 = vadd.f32 %v3334_v29, %v3312_v27  ;;  %v3054_v46 = vand.u32 15, %v2936_v41 }
 0x1ae   : > { %v3314_v44 = vsel %vm3242_vm6, %v4541_v34, 0.0  ;;  %v2944_v41 = vadd.s32 184, %v5640_v40 }
 0x1af   : > { %v3336_v52 = vadd.f32 %v4542_v38, %v3335_v39  ;;  %v3367_v54 = vmul.f32 %v4542_v38, %v4542_v38  ;;  %v3389_v55 = vadd.f32 %v3388_v37, %v3366_v36  ;;  %v4512_v56 = vpop.f32.mrb[10].mxu0  ;;  %v3368_v59 = vmul.f32 %v4541_v34, %v3314_v44 }
 0x1b0   : > { %v4543_v57 = vadd.f32 %v4512_v56, %v5646_v51  ;;  %v2827_v58 = vpop.f32.mrb[11].mxu0  ;;  %vm3248_vm9 = vcmp.lt.s32.totalorder %v3054_v46, 12  ;;  %v3096_v36 = vand.u32 15, %v2942_v18 }
 0x1b1   : > { %v3390_v42 = vadd.f32 %v3389_v55, %v3367_v54  ;;  %v4544_v60 = vadd.f32 %v2827_v58, %v5648_v53  ;;  %v3337_v61 = vadd.f32 %v3336_v52, %v3314_v44  ;;  %v2940_v53 = vadd.s32 152, %v5640_v40 }
 0x1b2   : > { %v3316_v62 = vsel %vm3244_vm7, %v4543_v57, 0.0  ;;  %v4363_v5 = vpop.f32.mrb[12].mxu1  ;;  %vm3254_vm12 = vcmp.lt.s32.totalorder %v3096_v36, 12 }
 0x1b3   : > { %v3338_v63 = vadd.f32 %v4544_v60, %v3337_v61  ;;  %v3369_v0 = vmul.f32 %v4544_v60, %v4544_v60  ;;  %v3391_v3 = vadd.f32 %v3390_v42, %v3368_v59  ;;  %v4515_v6 = vpop.f32.mrb[12].mxu0  ;;  %v1588_v9 = vpop.f32.mrb[13].mxu1  ;;  %v3370_v51 = vmul.f32 %v4543_v57, %v3316_v62 }
 0x1b4   : > { %v4545_v8 = vadd.f32 %v4515_v6, %v4363_v5  ;;  %v2837_v10 = vpop.f32.mrb[13].mxu0  ;;  %v3082_v17 = vand.u32 15, %v2940_v53 }
 0x1b5   : > { %v3392_v11 = vadd.f32 %v3391_v3, %v3369_v0  ;;  %v4546_v12 = vadd.f32 %v2837_v10, %v1588_v9  ;;  %v3339_v13 = vadd.f32 %v3338_v63, %v3316_v62  ;;  %v3110_v0 = vand.u32 15, %v2944_v41 }
 0x1b6   : > { %v3318_v25 = vsel %vm3246_vm8, %v4545_v8, 0.0  ;;  %v4366_v49 = vpop.f32.mrb[14].mxu1  ;;  %vm3252_vm11 = vcmp.lt.s32.totalorder %v3082_v17, 12 }
 0x1b7   : > { %v3340_v43 = vadd.f32 %v4546_v12, %v3339_v13  ;;  %v3371_v45 = vmul.f32 %v4546_v12, %v4546_v12  ;;  %v3393_v47 = vadd.f32 %v3392_v11, %v3370_v51  ;;  %v4518_v2 = vpop.f32.mrb[14].mxu0  ;;  %v1598_v23 = vpop.f32.mrb[15].mxu1  ;;  %v3372_v24 = vmul.f32 %v4545_v8, %v3318_v25 }
 0x1b8   : > { %v4547_v4 = vadd.f32 %v4518_v2, %v4366_v49  ;;  %v2847_v50 = vpop.f32.mrb[15].mxu0  ;;  %vm3256_vm13 = vcmp.lt.s32.totalorder %v3110_v0, 12 }
 0x1b9   : > { %v3394_v14 = vadd.f32 %v3393_v47, %v3371_v45  ;;  %v4548_v1 = vadd.f32 %v2847_v50, %v1598_v23  ;;  %v3341_v15 = vadd.f32 %v3340_v43, %v3318_v25 }
 0x1ba   : > { %v3320_v16 = vsel %vm3248_vm9, %v4547_v4, 0.0  ;;  %v4369_v26 = vpop.f32.mrb[16].mxu1 }
 0x1bb   : > { %v3342_v19 = vadd.f32 %v4548_v1, %v3341_v15  ;;  %v3373_v20 = vmul.f32 %v4548_v1, %v4548_v1  ;;  %v3395_v21 = vadd.f32 %v3394_v14, %v3372_v24  ;;  %v4521_v27 = vpop.f32.mrb[16].mxu0  ;;  %v1608_v29 = vpop.f32.mrb[17].mxu1  ;;  %v3374_v31 = vmul.f32 %v4547_v4, %v3320_v16 }
 0x1bc   : > { %v4549_v28 = vadd.f32 %v4521_v27, %v4369_v26  ;;  %v2857_v30 = vpop.f32.mrb[17].mxu0 }
 0x1bd   : > { %v3396_v32 = vadd.f32 %v3395_v21, %v3373_v20  ;;  %v4550_v33 = vadd.f32 %v2857_v30, %v1608_v29  ;;  %v3343_v34 = vadd.f32 %v3342_v19, %v3320_v16 }
 0x1be   : > { %v3322_v35 = vsel %vm3250_vm10, %v4549_v28, 0.0  ;;  %v4372_v44 = vpop.f32.mrb[18].mxu1 }
 0x1bf   : > { %v3344_v37 = vadd.f32 %v4550_v33, %v3343_v34  ;;  %v3375_v38 = vmul.f32 %v4550_v33, %v4550_v33  ;;  %v3397_v39 = vadd.f32 %v3396_v32, %v3374_v31  ;;  %v4524_v48 = vpop.f32.mrb[18].mxu0  ;;  %v1618_v54 = vpop.f32.mrb[19].mxu1  ;;  %v3376_v56 = vmul.f32 %v4549_v28, %v3322_v35 }
 0x1c0   : > { %v4551_v52 = vadd.f32 %v4524_v48, %v4372_v44  ;;  %v2867_v55 = vpop.f32.mrb[19].mxu0 }
 0x1c1   : > { %v3398_v57 = vadd.f32 %v3397_v39, %v3375_v38  ;;  %v4552_v58 = vadd.f32 %v2867_v55, %v1618_v54  ;;  %v3345_v59 = vadd.f32 %v3344_v37, %v3322_v35 }
 0x1c2   : > { %v3324_v42 = vsel %vm3252_vm11, %v4551_v52, 0.0  ;;  %v4375_v46 = vpop.f32.mrb[20].mxu1 }
 0x1c3   : > { %v3346_v60 = vadd.f32 %v4552_v58, %v3345_v59  ;;  %v3377_v61 = vmul.f32 %v4552_v58, %v4552_v58  ;;  %v3399_v62 = vadd.f32 %v3398_v57, %v3376_v56  ;;  %v4527_v63 = vpop.f32.mrb[20].mxu0  ;;  %v1628_v5 = vpop.f32.mrb[21].mxu1  ;;  %v3378_v7 = vmul.f32 %v4551_v52, %v3324_v42 }
 0x1c4   : > { %v4553_v3 = vadd.f32 %v4527_v63, %v4375_v46  ;;  %v2877_v6 = vpop.f32.mrb[21].mxu0 }
 0x1c5   : > { %v3400_v40 = vadd.f32 %v3399_v62, %v3377_v61  ;;  %v4554_v8 = vadd.f32 %v2877_v6, %v1628_v5  ;;  %v3347_v9 = vadd.f32 %v3346_v60, %v3324_v42 }
 0x1c6   : > { %v3326_v10 = vsel %vm3254_vm12, %v4553_v3, 0.0  ;;  %v4378_v13 = vpop.f32.mrb[22].mxu1 }
 0x1c7   : > { %v3348_v51 = vadd.f32 %v4554_v8, %v3347_v9  ;;  %v3379_v11 = vmul.f32 %v4554_v8, %v4554_v8  ;;  %v3401_v12 = vadd.f32 %v3400_v40, %v3378_v7  ;;  %v4530_v25 = vpop.f32.mrb[22].mxu0  ;;  %v1638_v43 = vpop.f32.mrb[23].mxu1  ;;  %v3380_v47 = vmul.f32 %v4553_v3, %v3326_v10 }
 0x1c8   : > { %v4555_v53 = vadd.f32 %v4530_v25, %v4378_v13  ;;  %v2887_v45 = vpop.f32.mrb[23].mxu0 }
 0x1c9   : > { %v3402_v49 = vadd.f32 %v3401_v12, %v3379_v11  ;;  %v4556_v2 = vadd.f32 %v2887_v45, %v1638_v43  ;;  %v3349_v22 = vadd.f32 %v3348_v51, %v3326_v10 }
 0x1ca   : > { %v3328_v4 = vsel %vm3256_vm13, %v4555_v53, 0.0 }
 0x1cb   : > { %v3350_v23 = vadd.f32 %v4556_v2, %v3349_v22  ;;  %v3381_v50 = vmul.f32 %v4556_v2, %v4556_v2  ;;  %v3403_v24 = vadd.f32 %v3402_v49, %v3380_v47  ;;  %v3382_v14 = vmul.f32 %v4555_v53, %v3328_v4 }
 0x1cd   : > { %v3351_v1 = vadd.f32 %v3350_v23, %v3328_v4  ;;  %v3404_v15 = vadd.f32 %v3403_v24, %v3381_v50 }
 0x1cf   : > { %v3352_v16 = vrot.slane %v3351_v1, 4  ;;  %v3405_v17 = vadd.f32 %v3404_v15, %v3382_v14 }
 0x1d1   : > { %v3353_v18 = vadd.f32 %v3352_v16, %v3351_v1  ;;  %v3406_v19 = vrot.slane %v3405_v17, 4 }
 0x1d3   : > { %v3354_v20 = vrot.slane %v3353_v18, 2  ;;  %v3407_v21 = vadd.f32 %v3406_v19, %v3405_v17 }
 0x1d5   : > { %v3355_v26 = vadd.f32 %v3354_v20, %v3353_v18  ;;  %v3408_v27 = vrot.slane %v3407_v21, 2 }
 0x1d7   : > { %v3356_v28 = vrot.slane %v3355_v26, 1  ;;  %v3409_v29 = vadd.f32 %v3408_v27, %v3407_v21 }
 0x1d9   : > { %v3357_v30 = vadd.f32 %v3356_v28, %v3355_v26  ;;  %v3410_v31 = vrot.slane %v3409_v29, 1 }
 0x1db   : > { %3358 = vst [vmem:[%s150_s3] sm:$0x1] %v3357_v30  ;;  %v3411_v32 = vadd.f32 %v3410_v31, %v3409_v29 }
 0x1dd   : > { %3412 = vst [vmem:[%s150_s3 + $0x1] sm:$0x1] %v3411_v32 }
 0x1de   : > { %4794 = shalt.err (!%p4791_p5)
}
 0x1df   : > { %s4795_s20 = scalar_lea.hbm %s5668_s7, 32  ;;  %s4799_s25 = scalar_lea.hbm %s5717_s2, 64 }
 0x1e0   : > { %p4796_p6 = scmp.ne.s32.totalorder %s5668_s7, %s4795_s20  ;;  %p4800_p10 = scmp.lt.u32.totalorder %s5668_s7, %s5717_s2 }
 0x1e1   : > { %p4801_p11 = scmp.lt.u32.totalorder %s4799_s25, %s4795_s20  ;;  %p4803_p13 = scmp.lt.u32.totalorder %s4795_s20, %s5668_s7 }
 0x1e2   : > { %p4797_p7 = pnand %p4796_p6, %p4917_p4 }
 0x1e3   : > { %p4802_p12 = por %p4801_p11, %p4800_p10 }
 0x1e4   : > { %p4798_p9 = pneg %p4797_p7 }
 0x1e5   : > { %p4804_p0 = por %p4803_p13, %p4802_p12 }
 0x1e7   : > { %p4805_p1 = pnand %p4804_p0, %p4798_p9 }
 0x1e9   : > { %4808 = shalt.err (!%p4805_p1)
}
 0x1ea   : > { %4726 = dma.vmem_to_hbm [thread:$0]  (%p4917_p4), %s5670_s4, 32, %s5668_s7, %s3414_s8  }
 0x1eb PF: > { %p4732_p2 = scmp.ge.s32.totalorder %s4859_s14, 2  ;;  %s3440_s28 = sand.u32 1, %s4839_s9  }
 0x1ec   : > { %s3441_s29 = scalar_lea.sflag [#allocation3], %s3440_s28 }
 0x1ed   : > { %p4729_p3 = pnand %p4732_p2, %p4924_p8 }
 0x1ef   : > { %4834 = dma.done.wait (!%p4729_p3), %s3441_s29, 32  }
 0x1f0   : > { %4836 = vsyncadd (!%p4729_p3), %s3441_s29, 4294967264  ;;  %s15_s14 = sadd.s32 1, %s4859_s14   ;;  %s5729_s9 = smov %s4843_s10 }
 0x1f1   : > { %p12_p5 = scmp.ge.s32.totalorder %s15_s14, 4   ;;  %s5730_s10 = smov %s4847_s11 }
 0x1f2   : > { %s5731_s11 = smov %s4930_s22  ;;  %s5732_s12 = smov %s4855_s13 }
 0x1f3   : > { %s5733_s13 = smov %s5735_s17  ;;  %14 = sbr.rel (!%p12_p5) target bundleno = 4 (0x4), region = 80 }
 0x1fa   :  { %3446 = vsyncpa [#allocation3], 1 }
 0x1fb   :  { %3448 = vsyncpa [#allocation3 + $0x1], 1 }

</bundles_post_ra>
